<compile_context>
chip_gen: v5e
topology: v5e:2x2
jax: 0.10.0
libtpu: 0.0.40
codegen_flags: <defaults>
</compile_context>

<pallas_src>
import functools

import numpy as np
import jax
import jax.numpy as jnp
from jax.experimental import pallas as pl
from jax.experimental.pallas import tpu as pltpu

EPS = 1e-5  # nn.LayerNorm default eps


def _vmem_limit_bytes():
    """~3/4 of physical VMEM (96 MiB on v5e/v6e, 48 MiB on v7x), with fallback."""
    cap = 64 * 1024 * 1024
    try:
        cap = int(getattr(pltpu.get_tpu_info(), "vmem_capacity_bytes", cap))
    except Exception:
        pass
    return max(32 * 1024 * 1024, (cap * 3) // 4)


def _layernorm_f32(x_f32, g_ref, b_ref):
    mu = jnp.mean(x_f32, axis=-1, keepdims=True)
    var = jnp.mean((x_f32 - mu) ** 2, axis=-1, keepdims=True)   # biased (torch)
    y = (x_f32 - mu) * jax.lax.rsqrt(var + EPS)
    return y * g_ref[...].astype(jnp.float32) + b_ref[...].astype(jnp.float32)


# ----------------------------------------------------------------------------
# Kernel 1: window gather (via BlockSpec) -> LayerNorm -> window MHA
#           -> output proj -> +residual -> scatter back in image layout
#   block = wb window-rows x 1 window-column  (wb*ws*ws token rows per step)
# ----------------------------------------------------------------------------
def _attn_kernel(x_ref, g_ref, b_ref, wqkv_ref, bqkv_ref, wp_ref, bp_ref,
                 bias_ref, o_ref, xs_ref, oc_ref, *, num_heads, wb, ws, scale):
    dt = x_ref.dtype
    C = x_ref.shape[-1]
    hd = C // num_heads
    n = ws * ws
    M = wb * n

    # In-VMEM "window partition": the HBM block is the raw image layout
    # (wb, ws, ws, C); pack it into token-major (M, C) scratch with masked
    # sub-tile stores (no value reshape across unaligned sublane tiles).
    for g in range(wb):
        for s1 in range(ws):
            r0 = g * n + s1 * ws
            xs_ref[r0:r0 + ws, :] = x_ref[g, s1]

    xn = _layernorm_f32(xs_ref[...].astype(jnp.float32), g_ref, b_ref).astype(dt)

    # Fused lane-dense QKV projection: one [M, C] x [C, 3C] MXU pass.
    qkv = jnp.dot(xn, wqkv_ref[...], preferred_element_type=jnp.float32)
    qkv = qkv + bqkv_ref[...].astype(jnp.float32)

    # Per-head block-diagonal attention (windows batched on the leading dim).
    for h in range(num_heads):
        q = (qkv[:, h * hd:(h + 1) * hd] * scale).astype(dt).reshape(wb, n, hd)
        k = qkv[:, C + h * hd:C + (h + 1) * hd].astype(dt).reshape(wb, n, hd)
        v = qkv[:, 2 * C + h * hd:2 * C + (h + 1) * hd].astype(dt).reshape(wb, n, hd)

        s = jax.lax.dot_general(q, k, (((2,), (2,)), ((0,), (0,))),
                                preferred_element_type=jnp.float32)   # [wb, n, n]
        s = s + bias_ref[h].astype(jnp.float32)[None]
        s = s - jnp.max(s, axis=-1, keepdims=True)
        p = jnp.exp(s)
        p = p / jnp.sum(p, axis=-1, keepdims=True)                    # exact softmax
        o = jax.lax.dot_general(p.astype(dt), v, (((2,), (1,)), ((0,), (0,))),
                                preferred_element_type=jnp.float32)   # [wb, n, hd]
        # heads occupy contiguous hd-lane slices of C -> assemble for one GEMM
        oc_ref[:, h * hd:(h + 1) * hd] = o.astype(dt).reshape(M, hd)

    # Single lane-dense output projection + bias + residual (re-read from ref).
    out = jnp.dot(oc_ref[...], wp_ref[...], preferred_element_type=jnp.float32)
    out = out + bp_ref[...].astype(jnp.float32) + xs_ref[...].astype(jnp.float32)
    xs_ref[...] = out.astype(dt)

    # In-VMEM "window reverse": scatter token rows back to the image layout.
    for g in range(wb):
        for s1 in range(ws):
            r0 = g * n + s1 * ws
            o_ref[g, s1] = xs_ref[r0:r0 + ws, :]


def _pick_window_rows(num_wrows, n_tok, target_rows=512):
    """Window-rows per attention grid step: largest divisor with wb*n <= target."""
    wb = 1
    for cand in range(1, num_wrows + 1):
        if num_wrows % cand == 0 and cand * n_tok <= target_rows:
            wb = cand
    return wb


def window_attention_block(x6, norm_g, norm_b, wqkv, bqkv, wproj, bproj,
                           rel_bias, *, num_heads):
    """x6: [B, H/ws, ws, W/ws, ws, C] (pure reshape of [B, L, C]).
    Returns x6 + window_attention(LN(x6)) in the same layout."""
    B, nwh, ws, nww, _, C = x6.shape
    nh = num_heads
    assert C % nh == 0
    n_tok = ws * ws
    wb = _pick_window_rows(nwh, n_tok)
    M = wb * n_tok
    vmem = _vmem_limit_bytes()

    kernel = functools.partial(_attn_kernel, num_heads=nh, wb=wb, ws=ws,
                               scale=(C // nh) ** (-0.5))
    win_map = lambda b, i, j: (b, i, 0, j, 0, 0)
    c2 = lambda b, i, j: (0, 0)
    c3 = lambda b, i, j: (0, 0, 0)

    return pl.pallas_call(
        kernel,
        out_shape=jax.ShapeDtypeStruct(x6.shape, x6.dtype),
        grid=(B, nwh // wb, nww),
        in_specs=[
            pl.BlockSpec((None, wb, ws, None, ws, C), win_map),
            pl.BlockSpec((1, C), c2),
            pl.BlockSpec((1, C), c2),
            pl.BlockSpec((C, 3 * C), c2),
            pl.BlockSpec((1, 3 * C), c2),
            pl.BlockSpec((C, C), c2),
            pl.BlockSpec((1, C), c2),
            pl.BlockSpec((nh, n_tok, n_tok), c3),
        ],
        out_specs=pl.BlockSpec((None, wb, ws, None, ws, C), win_map),
        scratch_shapes=[pltpu.VMEM((M, C), x6.dtype),    # token relayout / out
                        pltpu.VMEM((M, C), x6.dtype)],   # head re-assembly
        compiler_params=pltpu.CompilerParams(
            dimension_semantics=("parallel", "parallel", "parallel"),
            vmem_limit_bytes=vmem),
    )(x6, norm_g.reshape(1, C), norm_b.reshape(1, C), wqkv,
      bqkv.reshape(1, 3 * C), wproj, bproj.reshape(1, C), rel_bias)


# ----------------------------------------------------------------------------
# Kernel 2: fused LayerNorm -> fc1 -> GELU -> fc2 -> +residual (row-tiled)
# ----------------------------------------------------------------------------
def _ffn_kernel(x_ref, g_ref, b_ref, w1_ref, b1_ref, w2_ref, b2_ref, o_ref):
    dt = x_ref.dtype
    y = _layernorm_f32(x_ref[...].astype(jnp.float32), g_ref, b_ref)
    h = jnp.dot(y.astype(dt), w1_ref[...], preferred_element_type=jnp.float32)
    h = h + b1_ref[...].astype(jnp.float32)
    h = jax.nn.gelu(h, approximate=False)                     # exact (erf) GELU
    out = jnp.dot(h.astype(dt), w2_ref[...], preferred_element_type=jnp.float32)
    out = out + b2_ref[...].astype(jnp.float32) + x_ref[...].astype(jnp.float32)
    o_ref[...] = out.astype(o_ref.dtype)


def _pick_row_tile(R, C, Hd, budget_bytes, max_rows=1024):
    """Largest row tile (divisor of R, multiple of 8, <= max_rows) that fits VMEM."""
    cands = [d for d in range(8, min(R, max_rows) + 1, 8) if R % d == 0]
    if not cands:
        return R
    best = cands[0]
    for tr in cands:
        need = 4 * (4 * tr * C                 # in/out, double-buffered
                    + tr * Hd                  # f32 GELU intermediate
                    + 2 * (C * Hd + Hd * C)    # resident weights, double-buffered
                    + 2 * (2 * C + Hd))
        if need <= budget_bytes:
            best = tr
    return best


def ffn_residual_block(x2d, norm_g, norm_b, w1, b1, w2, b2):
    R, C = x2d.shape
    Hd = w1.shape[1]
    vmem = _vmem_limit_bytes()
    tr = _pick_row_tile(R, C, Hd, vmem)
    c2 = lambda i: (0, 0)
    return pl.pallas_call(
        _ffn_kernel,
        out_shape=jax.ShapeDtypeStruct((R, C), x2d.dtype),
        grid=(R // tr,),
        in_specs=[pl.BlockSpec((tr, C), lambda i: (i, 0)),
                  pl.BlockSpec((1, C), c2),
                  pl.BlockSpec((1, C), c2),
                  pl.BlockSpec((C, Hd), c2),
                  pl.BlockSpec((1, Hd), c2),
                  pl.BlockSpec((Hd, C), c2),
                  pl.BlockSpec((1, C), c2)],
        out_specs=pl.BlockSpec((tr, C), lambda i: (i, 0)),
        compiler_params=pltpu.CompilerParams(
            dimension_semantics=("parallel",),
            vmem_limit_bytes=vmem),
    )(x2d, norm_g.reshape(1, C), norm_b.reshape(1, C),
      w1, b1.reshape(1, Hd), w2, b2.reshape(1, C))


# ----------------------------------------------------------------------------
# Plain-JAX helpers (used only by the reference / bias construction)
# ----------------------------------------------------------------------------
def window_partition(x, ws):
    B, H, W, C = x.shape
    x = x.reshape(B, H // ws, ws, W // ws, ws, C)
    return x.transpose(0, 1, 3, 2, 4, 5).reshape(-1, ws, ws, C)


def window_reverse(windows, ws, H, W):
    C = windows.shape[-1]
    B = windows.shape[0] // ((H // ws) * (W // ws))
    x = windows.reshape(B, H // ws, W // ws, ws, ws, C)
    return x.transpose(0, 1, 3, 2, 4, 5).reshape(B, H, W, C)


def relative_position_bias(table, ws, num_heads):
    """table: [(2*ws-1)^2, nh]  ->  bias [nh, ws*ws, ws*ws]"""
    coords = np.stack(np.meshgrid(np.arange(ws), np.arange(ws), indexing="ij"))
    coords_flat = coords.reshape(2, -1)
    rel = coords_flat[:, :, None] - coords_flat[:, None, :]
    rel = rel.transpose(1, 2, 0).astype(np.int64)
    rel[:, :, 0] += ws - 1
    rel[:, :, 1] += ws - 1
    rel[:, :, 0] *= 2 * ws - 1
    index = rel.sum(-1)
    bias = table[jnp.asarray(index.reshape(-1))]
    bias = bias.reshape(ws * ws, ws * ws, num_heads)
    return jnp.transpose(bias, (2, 0, 1))


# ----------------------------------------------------------------------------
# Full SwinTransformerBlock forward (shift_size == 0)
# ----------------------------------------------------------------------------
def swin_block_forward(x, params, img_size, window_size, num_heads, rel_bias):
    H, W = img_size
    B, L, C = x.shape
    assert L == H * W, "input feature has wrong size"
    ws = window_size

    # Free reshape: the attention BlockSpec addresses window blocks directly
    # in the raw [B, H, W, C] layout (no XLA transpose passes).
    x6 = x.reshape(B, H // ws, ws, W // ws, ws, C)

    x1_6 = window_attention_block(x6, params["norm_g"], params["norm_b"],
                                  params["wqkv"], params["bqkv"],
                                  params["wproj"], params["bproj"],
                                  rel_bias, num_heads=num_heads)

    x1 = x1_6.reshape(B * L, C)          # free reshape back to token order
    out = ffn_residual_block(x1, params["norm_g"], params["norm_b"],
                             params["w1"], params["b1"],
                             params["w2"], params["b2"])
    return out.reshape(B, L, C)


# ----------------------------------------------------------------------------
# Pure-JAX reference (for correctness check)
# ----------------------------------------------------------------------------
def swin_block_reference(x, params, img_size, ws, num_heads, rel_bias):
    H, W = img_size
    B, L, C = x.shape
    hd = C // num_heads
    scale = hd ** (-0.5)

    def ln(v):
        mu = v.mean(-1, keepdims=True)
        var = ((v - mu) ** 2).mean(-1, keepdims=True)
        return (v - mu) / jnp.sqrt(var + EPS) * params["norm_g"] + params["norm_b"]

    res = x
    xn = ln(x).reshape(B, H, W, C)
    xw = window_partition(xn, ws).reshape(-1, ws * ws, C)
    Wn, N, _ = xw.shape

    qkv = xw @ params["wqkv"] + params["bqkv"]
    q = qkv[..., :C].reshape(Wn, N, num_heads, hd).transpose(0, 2, 1, 3)
    k = qkv[..., C:2 * C].reshape(Wn, N, num_heads, hd).transpose(0, 2, 1, 3)
    v = qkv[..., 2 * C:].reshape(Wn, N, num_heads, hd).transpose(0, 2, 1, 3)

    dots = jnp.einsum("whnd,whmd->whnm", q, k) * scale + rel_bias[None]
    attn = jax.nn.softmax(dots, axis=-1)
    o = jnp.einsum("whnm,whmd->whnd", attn, v)
    o = o.transpose(0, 2, 1, 3).reshape(Wn, N, C)
    o = o @ params["wproj"] + params["bproj"]
    o = window_reverse(o.reshape(Wn, ws, ws, C), ws, H, W).reshape(B, L, C)

    x1 = res + o
    y = ln(x1)
    h = jax.nn.gelu(y @ params["w1"] + params["b1"], approximate=False)
    return x1 + (h @ params["w2"] + params["b2"])


# ----------------------------------------------------------------------------
def _linear_init(key, fan_in, fan_out):
    kw, kb = jax.random.split(key)
    bound = 1.0 / np.sqrt(fan_in)
    w = jax.random.uniform(kw, (fan_in, fan_out), jnp.float32, -bound, bound)
    b = jax.random.uniform(kb, (fan_out,), jnp.float32, -bound, bound)
    return w, b


if __name__ == "__main__":
    # Small, module-consistent shapes.
    B, C = 2, 32
    H = W = 8
    window_size = 4
    num_heads = 4
    L = H * W
    hidden = C * 4  # expan_ration = 4

    key = jax.random.PRNGKey(0)
    ks = jax.random.split(key, 8)

    x = jax.random.normal(ks[0], (B, L, C), jnp.float32)

    wqkv, bqkv = _linear_init(ks[1], C, 3 * C)
    wproj, bproj = _linear_init(ks[2], C, C)
    w1, b1 = _linear_init(ks[3], C, hidden)
    w2, b2 = _linear_init(ks[4], hidden, C)
    rel_table = (0.02 * jax.random.truncated_normal(
        ks[5], -2.0, 2.0, ((2 * window_size - 1) ** 2, num_heads))).astype(jnp.float32)

    params = dict(
        norm_g=jnp.ones((C,), jnp.float32),
        norm_b=jnp.zeros((C,), jnp.float32),
        wqkv=wqkv, bqkv=bqkv, wproj=wproj, bproj=bproj,
        w1=w1, b1=b1, w2=w2, b2=b2,
    )
    rel_bias = relative_position_bias(rel_table, window_size, num_heads)

    out = swin_block_forward(x, params, (H, W), window_size, num_heads, rel_bias)
    out = jax.block_until_ready(out)

    with jax.default_matmul_precision("highest"):
        ref = swin_block_reference(x, params, (H, W), window_size, num_heads,
                                   rel_bias)
        ref = jax.block_until_ready(ref)

    np.testing.assert_allclose(np.asarray(out), np.asarray(ref),
                               rtol=2e-2, atol=2e-2)
    print("KERNEL_OK")
</pallas_src>

<mosaic_0001>
module attributes {stable_mosaic.version = 11 : i64} {
  func.func @_attn_kernel(%arg0: i32, %arg1: i32, %arg2: i32, %arg3: memref<1x2x4x1x4x32xf32, #tpu.memory_space<vmem>>, %arg4: memref<1x32xf32, #tpu.memory_space<vmem>>, %arg5: memref<1x32xf32, #tpu.memory_space<vmem>>, %arg6: memref<32x96xf32, #tpu.memory_space<vmem>>, %arg7: memref<1x96xf32, #tpu.memory_space<vmem>>, %arg8: memref<32x32xf32, #tpu.memory_space<vmem>>, %arg9: memref<1x32xf32, #tpu.memory_space<vmem>>, %arg10: memref<4x16x16xf32, #tpu.memory_space<vmem>>, %arg11: memref<1x2x4x1x4x32xf32, #tpu.memory_space<vmem>>, %arg12: memref<32x32xf32, #tpu.memory_space<vmem>>, %arg13: memref<32x32xf32, #tpu.memory_space<vmem>>) attributes {dimension_semantics = [#tpu.dimension_semantics<parallel>, #tpu.dimension_semantics<parallel>, #tpu.dimension_semantics<parallel>], iteration_bounds = array<i64: 2, 1, 2>, scalar_prefetch = 0 : i64, scratch_operands = 2 : i64, tpu.core_type = #tpu.core_type<tc>, window_params = [{transform_indices = @transform_0, window_bounds = array<i64: 1, 2, 4, 1, 4, 32>}, {pipeline_mode = #tpu.pipeline_mode<synchronous>, transform_indices = @transform_1, window_bounds = array<i64: 1, 32>}, {pipeline_mode = #tpu.pipeline_mode<synchronous>, transform_indices = @transform_2, window_bounds = array<i64: 1, 32>}, {pipeline_mode = #tpu.pipeline_mode<synchronous>, transform_indices = @transform_3, window_bounds = array<i64: 32, 96>}, {pipeline_mode = #tpu.pipeline_mode<synchronous>, transform_indices = @transform_4, window_bounds = array<i64: 1, 96>}, {pipeline_mode = #tpu.pipeline_mode<synchronous>, transform_indices = @transform_5, window_bounds = array<i64: 32, 32>}, {pipeline_mode = #tpu.pipeline_mode<synchronous>, transform_indices = @transform_6, window_bounds = array<i64: 1, 32>}, {pipeline_mode = #tpu.pipeline_mode<synchronous>, transform_indices = @transform_7, window_bounds = array<i64: 4, 16, 16>}, {transform_indices = @transform_8, window_bounds = array<i64: 1, 2, 4, 1, 4, 32>}]} {
    %c0 = arith.constant 0 : index
    %c0_0 = arith.constant 0 : index
    %c0_1 = arith.constant 0 : index
    %c0_2 = arith.constant 0 : index
    %c0_3 = arith.constant 0 : index
    %c0_4 = arith.constant 0 : index
    %0 = vector.load %arg3[%c0, %c0_0, %c0_1, %c0_2, %c0_3, %c0_4] : memref<1x2x4x1x4x32xf32, #tpu.memory_space<vmem>>, vector<1x1x1x1x4x32xf32>
    %1 = vector.shape_cast %0 : vector<1x1x1x1x4x32xf32> to vector<4x32xf32>
    %c0_5 = arith.constant 0 : index
    %c0_6 = arith.constant 0 : index
    %2 = vector.load %arg12[%c0_5, %c0_6] : memref<32x32xf32, #tpu.memory_space<vmem>>, vector<4x32xf32>
    tpu.vector_store %arg12[%c0_5, %c0_6], %1 {strides = array<i32>} : memref<32x32xf32, #tpu.memory_space<vmem>>, vector<4x32xf32>,
    %c0_7 = arith.constant 0 : index
    %c0_8 = arith.constant 0 : index
    %c1 = arith.constant 1 : index
    %c0_9 = arith.constant 0 : index
    %c0_10 = arith.constant 0 : index
    %c0_11 = arith.constant 0 : index
    %3 = vector.load %arg3[%c0_7, %c0_8, %c1, %c0_9, %c0_10, %c0_11] : memref<1x2x4x1x4x32xf32, #tpu.memory_space<vmem>>, vector<1x1x1x1x4x32xf32>
    %4 = vector.shape_cast %3 : vector<1x1x1x1x4x32xf32> to vector<4x32xf32>
    %c4 = arith.constant 4 : index
    %c0_12 = arith.constant 0 : index
    %5 = vector.load %arg12[%c4, %c0_12] : memref<32x32xf32, #tpu.memory_space<vmem>>, vector<4x32xf32>
    tpu.vector_store %arg12[%c4, %c0_12], %4 {strides = array<i32>} : memref<32x32xf32, #tpu.memory_space<vmem>>, vector<4x32xf32>,
    %c0_13 = arith.constant 0 : index
    %c0_14 = arith.constant 0 : index
    %c2 = arith.constant 2 : index
    %c0_15 = arith.constant 0 : index
    %c0_16 = arith.constant 0 : index
    %c0_17 = arith.constant 0 : index
    %6 = vector.load %arg3[%c0_13, %c0_14, %c2, %c0_15, %c0_16, %c0_17] : memref<1x2x4x1x4x32xf32, #tpu.memory_space<vmem>>, vector<1x1x1x1x4x32xf32>
    %7 = vector.shape_cast %6 : vector<1x1x1x1x4x32xf32> to vector<4x32xf32>
    %c8 = arith.constant 8 : index
    %c0_18 = arith.constant 0 : index
    %8 = vector.load %arg12[%c8, %c0_18] : memref<32x32xf32, #tpu.memory_space<vmem>>, vector<4x32xf32>
    tpu.vector_store %arg12[%c8, %c0_18], %7 {strides = array<i32>} : memref<32x32xf32, #tpu.memory_space<vmem>>, vector<4x32xf32>,
    %c0_19 = arith.constant 0 : index
    %c0_20 = arith.constant 0 : index
    %c3 = arith.constant 3 : index
    %c0_21 = arith.constant 0 : index
    %c0_22 = arith.constant 0 : index
    %c0_23 = arith.constant 0 : index
    %9 = vector.load %arg3[%c0_19, %c0_20, %c3, %c0_21, %c0_22, %c0_23] : memref<1x2x4x1x4x32xf32, #tpu.memory_space<vmem>>, vector<1x1x1x1x4x32xf32>
    %10 = vector.shape_cast %9 : vector<1x1x1x1x4x32xf32> to vector<4x32xf32>
    %c12 = arith.constant 12 : index
    %c0_24 = arith.constant 0 : index
    %11 = vector.load %arg12[%c12, %c0_24] : memref<32x32xf32, #tpu.memory_space<vmem>>, vector<4x32xf32>
    tpu.vector_store %arg12[%c12, %c0_24], %10 {strides = array<i32>} : memref<32x32xf32, #tpu.memory_space<vmem>>, vector<4x32xf32>,
    %c0_25 = arith.constant 0 : index
    %c1_26 = arith.constant 1 : index
    %c0_27 = arith.constant 0 : index
    %c0_28 = arith.constant 0 : index
    %c0_29 = arith.constant 0 : index
    %c0_30 = arith.constant 0 : index
    %12 = vector.load %arg3[%c0_25, %c1_26, %c0_27, %c0_28, %c0_29, %c0_30] : memref<1x2x4x1x4x32xf32, #tpu.memory_space<vmem>>, vector<1x1x1x1x4x32xf32>
    %13 = vector.shape_cast %12 : vector<1x1x1x1x4x32xf32> to vector<4x32xf32>
    %c16 = arith.constant 16 : index
    %c0_31 = arith.constant 0 : index
    %14 = vector.load %arg12[%c16, %c0_31] : memref<32x32xf32, #tpu.memory_space<vmem>>, vector<4x32xf32>
    tpu.vector_store %arg12[%c16, %c0_31], %13 {strides = array<i32>} : memref<32x32xf32, #tpu.memory_space<vmem>>, vector<4x32xf32>,
    %c0_32 = arith.constant 0 : index
    %c1_33 = arith.constant 1 : index
    %c1_34 = arith.constant 1 : index
    %c0_35 = arith.constant 0 : index
    %c0_36 = arith.constant 0 : index
    %c0_37 = arith.constant 0 : index
    %15 = vector.load %arg3[%c0_32, %c1_33, %c1_34, %c0_35, %c0_36, %c0_37] : memref<1x2x4x1x4x32xf32, #tpu.memory_space<vmem>>, vector<1x1x1x1x4x32xf32>
    %16 = vector.shape_cast %15 : vector<1x1x1x1x4x32xf32> to vector<4x32xf32>
    %c20 = arith.constant 20 : index
    %c0_38 = arith.constant 0 : index
    %17 = vector.load %arg12[%c20, %c0_38] : memref<32x32xf32, #tpu.memory_space<vmem>>, vector<4x32xf32>
    tpu.vector_store %arg12[%c20, %c0_38], %16 {strides = array<i32>} : memref<32x32xf32, #tpu.memory_space<vmem>>, vector<4x32xf32>,
    %c0_39 = arith.constant 0 : index
    %c1_40 = arith.constant 1 : index
    %c2_41 = arith.constant 2 : index
    %c0_42 = arith.constant 0 : index
    %c0_43 = arith.constant 0 : index
    %c0_44 = arith.constant 0 : index
    %18 = vector.load %arg3[%c0_39, %c1_40, %c2_41, %c0_42, %c0_43, %c0_44] : memref<1x2x4x1x4x32xf32, #tpu.memory_space<vmem>>, vector<1x1x1x1x4x32xf32>
    %19 = vector.shape_cast %18 : vector<1x1x1x1x4x32xf32> to vector<4x32xf32>
    %c24 = arith.constant 24 : index
    %c0_45 = arith.constant 0 : index
    %20 = vector.load %arg12[%c24, %c0_45] : memref<32x32xf32, #tpu.memory_space<vmem>>, vector<4x32xf32>
    tpu.vector_store %arg12[%c24, %c0_45], %19 {strides = array<i32>} : memref<32x32xf32, #tpu.memory_space<vmem>>, vector<4x32xf32>,
    %c0_46 = arith.constant 0 : index
    %c1_47 = arith.constant 1 : index
    %c3_48 = arith.constant 3 : index
    %c0_49 = arith.constant 0 : index
    %c0_50 = arith.constant 0 : index
    %c0_51 = arith.constant 0 : index
    %21 = vector.load %arg3[%c0_46, %c1_47, %c3_48, %c0_49, %c0_50, %c0_51] : memref<1x2x4x1x4x32xf32, #tpu.memory_space<vmem>>, vector<1x1x1x1x4x32xf32>
    %22 = vector.shape_cast %21 : vector<1x1x1x1x4x32xf32> to vector<4x32xf32>
    %c28 = arith.constant 28 : index
    %c0_52 = arith.constant 0 : index
    %23 = vector.load %arg12[%c28, %c0_52] : memref<32x32xf32, #tpu.memory_space<vmem>>, vector<4x32xf32>
    tpu.vector_store %arg12[%c28, %c0_52], %22 {strides = array<i32>} : memref<32x32xf32, #tpu.memory_space<vmem>>, vector<4x32xf32>,
    %c0_53 = arith.constant 0 : index
    %c0_54 = arith.constant 0 : index
    %24 = vector.load %arg12[%c0_53, %c0_54] : memref<32x32xf32, #tpu.memory_space<vmem>>, vector<32x32xf32>
    %cst = arith.constant dense<0.000000e+00> : vector<32xf32>
    %25 = vector.multi_reduction <add>, %24, %cst [1] : vector<32x32xf32> to vector<32xf32>
    %26 = vector.shape_cast %25 : vector<32xf32> to vector<32x1xf32>
    %cst_55 = arith.constant 3.200000e+01 : f32
    %27 = vector.broadcast %cst_55 : f32 to vector<32x1xf32>
    %28 = arith.divf %26, %27 : vector<32x1xf32>
    %29 = vector.broadcast %28 : vector<32x1xf32> to vector<32x32xf32>
    %30 = arith.subf %24, %29 : vector<32x32xf32>
    %31 = arith.mulf %30, %30 : vector<32x32xf32>
    %cst_56 = arith.constant dense<0.000000e+00> : vector<32xf32>
    %32 = vector.multi_reduction <add>, %31, %cst_56 [1] : vector<32x32xf32> to vector<32xf32>
    %33 = vector.shape_cast %32 : vector<32xf32> to vector<32x1xf32>
    %cst_57 = arith.constant 3.200000e+01 : f32
    %34 = vector.broadcast %cst_57 : f32 to vector<32x1xf32>
    %35 = arith.divf %33, %34 : vector<32x1xf32>
    %36 = vector.broadcast %28 : vector<32x1xf32> to vector<32x32xf32>
    %37 = arith.subf %24, %36 : vector<32x32xf32>
    %cst_58 = arith.constant 9.99999974E-6 : f32
    %38 = vector.broadcast %cst_58 : f32 to vector<32x1xf32>
    %39 = arith.addf %35, %38 : vector<32x1xf32>
    %40 = math.rsqrt %39 : vector<32x1xf32>
    %41 = vector.broadcast %40 : vector<32x1xf32> to vector<32x32xf32>
    %42 = arith.mulf %37, %41 : vector<32x32xf32>
    %c0_59 = arith.constant 0 : index
    %c0_60 = arith.constant 0 : index
    %43 = vector.load %arg4[%c0_59, %c0_60] : memref<1x32xf32, #tpu.memory_space<vmem>>, vector<1x32xf32>
    %44 = vector.broadcast %43 : vector<1x32xf32> to vector<32x32xf32>
    %45 = arith.mulf %42, %44 : vector<32x32xf32>
    %c0_61 = arith.constant 0 : index
    %c0_62 = arith.constant 0 : index
    %46 = vector.load %arg5[%c0_61, %c0_62] : memref<1x32xf32, #tpu.memory_space<vmem>>, vector<1x32xf32>
    %47 = vector.broadcast %46 : vector<1x32xf32> to vector<32x32xf32>
    %48 = arith.addf %45, %47 : vector<32x32xf32>
    %c0_63 = arith.constant 0 : index
    %c0_64 = arith.constant 0 : index
    %49 = vector.load %arg6[%c0_63, %c0_64] : memref<32x96xf32, #tpu.memory_space<vmem>>, vector<32x96xf32>
    %cst_65 = arith.constant dense<0.000000e+00> : vector<32x96xf32>
    %50 = tpu.matmul %48, %49, %cst_65 {dimension_numbers = #tpu.dot_dimension_numbers<[1], [0], [0], [1], [0, 0, 1, 1], [], []>} : vector<32x32xf32>, vector<32x96xf32>, vector<32x96xf32> -> vector<32x96xf32>
    %c0_66 = arith.constant 0 : index
    %c0_67 = arith.constant 0 : index
    %51 = vector.load %arg7[%c0_66, %c0_67] : memref<1x96xf32, #tpu.memory_space<vmem>>, vector<1x96xf32>
    %52 = vector.broadcast %51 : vector<1x96xf32> to vector<32x96xf32>
    %53 = arith.addf %50, %52 : vector<32x96xf32>
    %54 = vector.extract_strided_slice %53 {offsets = [0, 0], sizes = [32, 8], strides = [1, 1]} : vector<32x96xf32> to vector<32x8xf32>
    %cst_68 = arith.constant 0.353553385 : f32
    %55 = vector.broadcast %cst_68 : f32 to vector<32x8xf32>
    %56 = arith.mulf %54, %55 : vector<32x8xf32>
    %57 = vector.shape_cast %56 : vector<32x8xf32> to vector<2x16x8xf32>
    %58 = vector.extract_strided_slice %53 {offsets = [0, 32], sizes = [32, 8], strides = [1, 1]} : vector<32x96xf32> to vector<32x8xf32>
    %59 = vector.shape_cast %58 : vector<32x8xf32> to vector<2x16x8xf32>
    %60 = vector.extract_strided_slice %53 {offsets = [0, 64], sizes = [32, 8], strides = [1, 1]} : vector<32x96xf32> to vector<32x8xf32>
    %61 = vector.shape_cast %60 : vector<32x8xf32> to vector<2x16x8xf32>
    %cst_69 = arith.constant dense<0.000000e+00> : vector<2x16x16xf32>
    %62 = tpu.matmul %57, %59, %cst_69 {dimension_numbers = #tpu.dot_dimension_numbers<[2], [2], [1], [1], [0, 0, 0, 1, 1, 1], [0], [0]>} : vector<2x16x8xf32>, vector<2x16x8xf32>, vector<2x16x16xf32> -> vector<2x16x16xf32>
    %c0_70 = arith.constant 0 : index
    %c0_71 = arith.constant 0 : index
    %c0_72 = arith.constant 0 : index
    %63 = vector.load %arg10[%c0_70, %c0_71, %c0_72] : memref<4x16x16xf32, #tpu.memory_space<vmem>>, vector<1x16x16xf32>
    %64 = vector.shape_cast %63 : vector<1x16x16xf32> to vector<16x16xf32>
    %65 = vector.shape_cast %64 : vector<16x16xf32> to vector<1x16x16xf32>
    %66 = vector.broadcast %65 : vector<1x16x16xf32> to vector<2x16x16xf32>
    %67 = arith.addf %62, %66 : vector<2x16x16xf32>
    %cst_73 = arith.constant dense<0xFF800000> : vector<2x16xf32>
    %68 = vector.multi_reduction <maximumf>, %67, %cst_73 [2] : vector<2x16x16xf32> to vector<2x16xf32>
    %69 = vector.shape_cast %68 : vector<2x16xf32> to vector<2x16x1xf32>
    %70 = vector.broadcast %69 : vector<2x16x1xf32> to vector<2x16x16xf32>
    %71 = arith.subf %67, %70 : vector<2x16x16xf32>
    %72 = math.exp %71 : vector<2x16x16xf32>
    %cst_74 = arith.constant dense<0.000000e+00> : vector<2x16xf32>
    %73 = vector.multi_reduction <add>, %72, %cst_74 [2] : vector<2x16x16xf32> to vector<2x16xf32>
    %74 = vector.shape_cast %73 : vector<2x16xf32> to vector<2x16x1xf32>
    %75 = vector.broadcast %74 : vector<2x16x1xf32> to vector<2x16x16xf32>
    %76 = arith.divf %72, %75 : vector<2x16x16xf32>
    %cst_75 = arith.constant dense<0.000000e+00> : vector<2x16x8xf32>
    %77 = tpu.matmul %76, %61, %cst_75 {dimension_numbers = #tpu.dot_dimension_numbers<[2], [1], [1], [2], [0, 0, 0, 1, 1, 2], [0], [0]>} : vector<2x16x16xf32>, vector<2x16x8xf32>, vector<2x16x8xf32> -> vector<2x16x8xf32>
    %78 = vector.shape_cast %77 : vector<2x16x8xf32> to vector<32x8xf32>
    %c0_76 = arith.constant 0 : index
    %c0_77 = arith.constant 0 : index
    %79 = vector.load %arg13[%c0_76, %c0_77] : memref<32x32xf32, #tpu.memory_space<vmem>>, vector<32x8xf32>
    tpu.vector_store %arg13[%c0_76, %c0_77], %78 {strides = array<i32>} : memref<32x32xf32, #tpu.memory_space<vmem>>, vector<32x8xf32>,
    %80 = vector.extract_strided_slice %53 {offsets = [0, 8], sizes = [32, 8], strides = [1, 1]} : vector<32x96xf32> to vector<32x8xf32>
    %cst_78 = arith.constant 0.353553385 : f32
    %81 = vector.broadcast %cst_78 : f32 to vector<32x8xf32>
    %82 = arith.mulf %80, %81 : vector<32x8xf32>
    %83 = vector.shape_cast %82 : vector<32x8xf32> to vector<2x16x8xf32>
    %84 = vector.extract_strided_slice %53 {offsets = [0, 40], sizes = [32, 8], strides = [1, 1]} : vector<32x96xf32> to vector<32x8xf32>
    %85 = vector.shape_cast %84 : vector<32x8xf32> to vector<2x16x8xf32>
    %86 = vector.extract_strided_slice %53 {offsets = [0, 72], sizes = [32, 8], strides = [1, 1]} : vector<32x96xf32> to vector<32x8xf32>
    %87 = vector.shape_cast %86 : vector<32x8xf32> to vector<2x16x8xf32>
    %cst_79 = arith.constant dense<0.000000e+00> : vector<2x16x16xf32>
    %88 = tpu.matmul %83, %85, %cst_79 {dimension_numbers = #tpu.dot_dimension_numbers<[2], [2], [1], [1], [0, 0, 0, 1, 1, 1], [0], [0]>} : vector<2x16x8xf32>, vector<2x16x8xf32>, vector<2x16x16xf32> -> vector<2x16x16xf32>
    %c1_80 = arith.constant 1 : index
    %c0_81 = arith.constant 0 : index
    %c0_82 = arith.constant 0 : index
    %89 = vector.load %arg10[%c1_80, %c0_81, %c0_82] : memref<4x16x16xf32, #tpu.memory_space<vmem>>, vector<1x16x16xf32>
    %90 = vector.shape_cast %89 : vector<1x16x16xf32> to vector<16x16xf32>
    %91 = vector.shape_cast %90 : vector<16x16xf32> to vector<1x16x16xf32>
    %92 = vector.broadcast %91 : vector<1x16x16xf32> to vector<2x16x16xf32>
    %93 = arith.addf %88, %92 : vector<2x16x16xf32>
    %cst_83 = arith.constant dense<0xFF800000> : vector<2x16xf32>
    %94 = vector.multi_reduction <maximumf>, %93, %cst_83 [2] : vector<2x16x16xf32> to vector<2x16xf32>
    %95 = vector.shape_cast %94 : vector<2x16xf32> to vector<2x16x1xf32>
    %96 = vector.broadcast %95 : vector<2x16x1xf32> to vector<2x16x16xf32>
    %97 = arith.subf %93, %96 : vector<2x16x16xf32>
    %98 = math.exp %97 : vector<2x16x16xf32>
    %cst_84 = arith.constant dense<0.000000e+00> : vector<2x16xf32>
    %99 = vector.multi_reduction <add>, %98, %cst_84 [2] : vector<2x16x16xf32> to vector<2x16xf32>
    %100 = vector.shape_cast %99 : vector<2x16xf32> to vector<2x16x1xf32>
    %101 = vector.broadcast %100 : vector<2x16x1xf32> to vector<2x16x16xf32>
    %102 = arith.divf %98, %101 : vector<2x16x16xf32>
    %cst_85 = arith.constant dense<0.000000e+00> : vector<2x16x8xf32>
    %103 = tpu.matmul %102, %87, %cst_85 {dimension_numbers = #tpu.dot_dimension_numbers<[2], [1], [1], [2], [0, 0, 0, 1, 1, 2], [0], [0]>} : vector<2x16x16xf32>, vector<2x16x8xf32>, vector<2x16x8xf32> -> vector<2x16x8xf32>
    %104 = vector.shape_cast %103 : vector<2x16x8xf32> to vector<32x8xf32>
    %c0_86 = arith.constant 0 : index
    %c8_87 = arith.constant 8 : index
    %105 = vector.load %arg13[%c0_86, %c8_87] : memref<32x32xf32, #tpu.memory_space<vmem>>, vector<32x8xf32>
    tpu.vector_store %arg13[%c0_86, %c8_87], %104 {strides = array<i32>} : memref<32x32xf32, #tpu.memory_space<vmem>>, vector<32x8xf32>,
    %106 = vector.extract_strided_slice %53 {offsets = [0, 16], sizes = [32, 8], strides = [1, 1]} : vector<32x96xf32> to vector<32x8xf32>
    %cst_88 = arith.constant 0.353553385 : f32
    %107 = vector.broadcast %cst_88 : f32 to vector<32x8xf32>
    %108 = arith.mulf %106, %107 : vector<32x8xf32>
    %109 = vector.shape_cast %108 : vector<32x8xf32> to vector<2x16x8xf32>
    %110 = vector.extract_strided_slice %53 {offsets = [0, 48], sizes = [32, 8], strides = [1, 1]} : vector<32x96xf32> to vector<32x8xf32>
    %111 = vector.shape_cast %110 : vector<32x8xf32> to vector<2x16x8xf32>
    %112 = vector.extract_strided_slice %53 {offsets = [0, 80], sizes = [32, 8], strides = [1, 1]} : vector<32x96xf32> to vector<32x8xf32>
    %113 = vector.shape_cast %112 : vector<32x8xf32> to vector<2x16x8xf32>
    %cst_89 = arith.constant dense<0.000000e+00> : vector<2x16x16xf32>
    %114 = tpu.matmul %109, %111, %cst_89 {dimension_numbers = #tpu.dot_dimension_numbers<[2], [2], [1], [1], [0, 0, 0, 1, 1, 1], [0], [0]>} : vector<2x16x8xf32>, vector<2x16x8xf32>, vector<2x16x16xf32> -> vector<2x16x16xf32>
    %c2_90 = arith.constant 2 : index
    %c0_91 = arith.constant 0 : index
    %c0_92 = arith.constant 0 : index
    %115 = vector.load %arg10[%c2_90, %c0_91, %c0_92] : memref<4x16x16xf32, #tpu.memory_space<vmem>>, vector<1x16x16xf32>
    %116 = vector.shape_cast %115 : vector<1x16x16xf32> to vector<16x16xf32>
    %117 = vector.shape_cast %116 : vector<16x16xf32> to vector<1x16x16xf32>
    %118 = vector.broadcast %117 : vector<1x16x16xf32> to vector<2x16x16xf32>
    %119 = arith.addf %114, %118 : vector<2x16x16xf32>
    %cst_93 = arith.constant dense<0xFF800000> : vector<2x16xf32>
    %120 = vector.multi_reduction <maximumf>, %119, %cst_93 [2] : vector<2x16x16xf32> to vector<2x16xf32>
    %121 = vector.shape_cast %120 : vector<2x16xf32> to vector<2x16x1xf32>
    %122 = vector.broadcast %121 : vector<2x16x1xf32> to vector<2x16x16xf32>
    %123 = arith.subf %119, %122 : vector<2x16x16xf32>
    %124 = math.exp %123 : vector<2x16x16xf32>
    %cst_94 = arith.constant dense<0.000000e+00> : vector<2x16xf32>
    %125 = vector.multi_reduction <add>, %124, %cst_94 [2] : vector<2x16x16xf32> to vector<2x16xf32>
    %126 = vector.shape_cast %125 : vector<2x16xf32> to vector<2x16x1xf32>
    %127 = vector.broadcast %126 : vector<2x16x1xf32> to vector<2x16x16xf32>
    %128 = arith.divf %124, %127 : vector<2x16x16xf32>
    %cst_95 = arith.constant dense<0.000000e+00> : vector<2x16x8xf32>
    %129 = tpu.matmul %128, %113, %cst_95 {dimension_numbers = #tpu.dot_dimension_numbers<[2], [1], [1], [2], [0, 0, 0, 1, 1, 2], [0], [0]>} : vector<2x16x16xf32>, vector<2x16x8xf32>, vector<2x16x8xf32> -> vector<2x16x8xf32>
    %130 = vector.shape_cast %129 : vector<2x16x8xf32> to vector<32x8xf32>
    %c0_96 = arith.constant 0 : index
    %c16_97 = arith.constant 16 : index
    %131 = vector.load %arg13[%c0_96, %c16_97] : memref<32x32xf32, #tpu.memory_space<vmem>>, vector<32x8xf32>
    tpu.vector_store %arg13[%c0_96, %c16_97], %130 {strides = array<i32>} : memref<32x32xf32, #tpu.memory_space<vmem>>, vector<32x8xf32>,
    %132 = vector.extract_strided_slice %53 {offsets = [0, 24], sizes = [32, 8], strides = [1, 1]} : vector<32x96xf32> to vector<32x8xf32>
    %cst_98 = arith.constant 0.353553385 : f32
    %133 = vector.broadcast %cst_98 : f32 to vector<32x8xf32>
    %134 = arith.mulf %132, %133 : vector<32x8xf32>
    %135 = vector.shape_cast %134 : vector<32x8xf32> to vector<2x16x8xf32>
    %136 = vector.extract_strided_slice %53 {offsets = [0, 56], sizes = [32, 8], strides = [1, 1]} : vector<32x96xf32> to vector<32x8xf32>
    %137 = vector.shape_cast %136 : vector<32x8xf32> to vector<2x16x8xf32>
    %138 = vector.extract_strided_slice %53 {offsets = [0, 88], sizes = [32, 8], strides = [1, 1]} : vector<32x96xf32> to vector<32x8xf32>
    %139 = vector.shape_cast %138 : vector<32x8xf32> to vector<2x16x8xf32>
    %cst_99 = arith.constant dense<0.000000e+00> : vector<2x16x16xf32>
    %140 = tpu.matmul %135, %137, %cst_99 {dimension_numbers = #tpu.dot_dimension_numbers<[2], [2], [1], [1], [0, 0, 0, 1, 1, 1], [0], [0]>} : vector<2x16x8xf32>, vector<2x16x8xf32>, vector<2x16x16xf32> -> vector<2x16x16xf32>
    %c3_100 = arith.constant 3 : index
    %c0_101 = arith.constant 0 : index
    %c0_102 = arith.constant 0 : index
    %141 = vector.load %arg10[%c3_100, %c0_101, %c0_102] : memref<4x16x16xf32, #tpu.memory_space<vmem>>, vector<1x16x16xf32>
    %142 = vector.shape_cast %141 : vector<1x16x16xf32> to vector<16x16xf32>
    %143 = vector.shape_cast %142 : vector<16x16xf32> to vector<1x16x16xf32>
    %144 = vector.broadcast %143 : vector<1x16x16xf32> to vector<2x16x16xf32>
    %145 = arith.addf %140, %144 : vector<2x16x16xf32>
    %cst_103 = arith.constant dense<0xFF800000> : vector<2x16xf32>
    %146 = vector.multi_reduction <maximumf>, %145, %cst_103 [2] : vector<2x16x16xf32> to vector<2x16xf32>
    %147 = vector.shape_cast %146 : vector<2x16xf32> to vector<2x16x1xf32>
    %148 = vector.broadcast %147 : vector<2x16x1xf32> to vector<2x16x16xf32>
    %149 = arith.subf %145, %148 : vector<2x16x16xf32>
    %150 = math.exp %149 : vector<2x16x16xf32>
    %cst_104 = arith.constant dense<0.000000e+00> : vector<2x16xf32>
    %151 = vector.multi_reduction <add>, %150, %cst_104 [2] : vector<2x16x16xf32> to vector<2x16xf32>
    %152 = vector.shape_cast %151 : vector<2x16xf32> to vector<2x16x1xf32>
    %153 = vector.broadcast %152 : vector<2x16x1xf32> to vector<2x16x16xf32>
    %154 = arith.divf %150, %153 : vector<2x16x16xf32>
    %cst_105 = arith.constant dense<0.000000e+00> : vector<2x16x8xf32>
    %155 = tpu.matmul %154, %139, %cst_105 {dimension_numbers = #tpu.dot_dimension_numbers<[2], [1], [1], [2], [0, 0, 0, 1, 1, 2], [0], [0]>} : vector<2x16x16xf32>, vector<2x16x8xf32>, vector<2x16x8xf32> -> vector<2x16x8xf32>
    %156 = vector.shape_cast %155 : vector<2x16x8xf32> to vector<32x8xf32>
    %c0_106 = arith.constant 0 : index
    %c24_107 = arith.constant 24 : index
    %157 = vector.load %arg13[%c0_106, %c24_107] : memref<32x32xf32, #tpu.memory_space<vmem>>, vector<32x8xf32>
    tpu.vector_store %arg13[%c0_106, %c24_107], %156 {strides = array<i32>} : memref<32x32xf32, #tpu.memory_space<vmem>>, vector<32x8xf32>,
    %c0_108 = arith.constant 0 : index
    %c0_109 = arith.constant 0 : index
    %158 = vector.load %arg13[%c0_108, %c0_109] : memref<32x32xf32, #tpu.memory_space<vmem>>, vector<32x32xf32>
    %c0_110 = arith.constant 0 : index
    %c0_111 = arith.constant 0 : index
    %159 = vector.load %arg8[%c0_110, %c0_111] : memref<32x32xf32, #tpu.memory_space<vmem>>, vector<32x32xf32>
    %cst_112 = arith.constant dense<0.000000e+00> : vector<32x32xf32>
    %160 = tpu.matmul %158, %159, %cst_112 {dimension_numbers = #tpu.dot_dimension_numbers<[1], [0], [0], [1], [0, 0, 1, 1], [], []>} : vector<32x32xf32>, vector<32x32xf32>, vector<32x32xf32> -> vector<32x32xf32>
    %c0_113 = arith.constant 0 : index
    %c0_114 = arith.constant 0 : index
    %161 = vector.load %arg9[%c0_113, %c0_114] : memref<1x32xf32, #tpu.memory_space<vmem>>, vector<1x32xf32>
    %162 = vector.broadcast %161 : vector<1x32xf32> to vector<32x32xf32>
    %163 = arith.addf %160, %162 : vector<32x32xf32>
    %c0_115 = arith.constant 0 : index
    %c0_116 = arith.constant 0 : index
    %164 = vector.load %arg12[%c0_115, %c0_116] : memref<32x32xf32, #tpu.memory_space<vmem>>, vector<32x32xf32>
    %165 = arith.addf %163, %164 : vector<32x32xf32>
    %c0_117 = arith.constant 0 : index
    %c0_118 = arith.constant 0 : index
    %166 = vector.load %arg12[%c0_117, %c0_118] : memref<32x32xf32, #tpu.memory_space<vmem>>, vector<32x32xf32>
    tpu.vector_store %arg12[%c0_117, %c0_118], %165 {strides = array<i32>} : memref<32x32xf32, #tpu.memory_space<vmem>>, vector<32x32xf32>,
    %c0_119 = arith.constant 0 : index
    %c0_120 = arith.constant 0 : index
    %167 = vector.load %arg12[%c0_119, %c0_120] : memref<32x32xf32, #tpu.memory_space<vmem>>, vector<4x32xf32>
    %c0_121 = arith.constant 0 : index
    %c0_122 = arith.constant 0 : index
    %c0_123 = arith.constant 0 : index
    %c0_124 = arith.constant 0 : index
    %c0_125 = arith.constant 0 : index
    %c0_126 = arith.constant 0 : index
    %168 = vector.load %arg11[%c0_121, %c0_122, %c0_123, %c0_124, %c0_125, %c0_126] : memref<1x2x4x1x4x32xf32, #tpu.memory_space<vmem>>, vector<1x1x1x1x4x32xf32>
    %169 = vector.shape_cast %168 : vector<1x1x1x1x4x32xf32> to vector<4x32xf32>
    %170 = vector.shape_cast %167 : vector<4x32xf32> to vector<1x1x1x1x4x32xf32>
    tpu.vector_store %arg11[%c0_121, %c0_122, %c0_123, %c0_124, %c0_125, %c0_126], %170 {strides = array<i32>} : memref<1x2x4x1x4x32xf32, #tpu.memory_space<vmem>>, vector<1x1x1x1x4x32xf32>,
    %c4_127 = arith.constant 4 : index
    %c0_128 = arith.constant 0 : index
    %171 = vector.load %arg12[%c4_127, %c0_128] : memref<32x32xf32, #tpu.memory_space<vmem>>, vector<4x32xf32>
    %c0_129 = arith.constant 0 : index
    %c0_130 = arith.constant 0 : index
    %c1_131 = arith.constant 1 : index
    %c0_132 = arith.constant 0 : index
    %c0_133 = arith.constant 0 : index
    %c0_134 = arith.constant 0 : index
    %172 = vector.load %arg11[%c0_129, %c0_130, %c1_131, %c0_132, %c0_133, %c0_134] : memref<1x2x4x1x4x32xf32, #tpu.memory_space<vmem>>, vector<1x1x1x1x4x32xf32>
    %173 = vector.shape_cast %172 : vector<1x1x1x1x4x32xf32> to vector<4x32xf32>
    %174 = vector.shape_cast %171 : vector<4x32xf32> to vector<1x1x1x1x4x32xf32>
    tpu.vector_store %arg11[%c0_129, %c0_130, %c1_131, %c0_132, %c0_133, %c0_134], %174 {strides = array<i32>} : memref<1x2x4x1x4x32xf32, #tpu.memory_space<vmem>>, vector<1x1x1x1x4x32xf32>,
    %c8_135 = arith.constant 8 : index
    %c0_136 = arith.constant 0 : index
    %175 = vector.load %arg12[%c8_135, %c0_136] : memref<32x32xf32, #tpu.memory_space<vmem>>, vector<4x32xf32>
    %c0_137 = arith.constant 0 : index
    %c0_138 = arith.constant 0 : index
    %c2_139 = arith.constant 2 : index
    %c0_140 = arith.constant 0 : index
    %c0_141 = arith.constant 0 : index
    %c0_142 = arith.constant 0 : index
    %176 = vector.load %arg11[%c0_137, %c0_138, %c2_139, %c0_140, %c0_141, %c0_142] : memref<1x2x4x1x4x32xf32, #tpu.memory_space<vmem>>, vector<1x1x1x1x4x32xf32>
    %177 = vector.shape_cast %176 : vector<1x1x1x1x4x32xf32> to vector<4x32xf32>
    %178 = vector.shape_cast %175 : vector<4x32xf32> to vector<1x1x1x1x4x32xf32>
    tpu.vector_store %arg11[%c0_137, %c0_138, %c2_139, %c0_140, %c0_141, %c0_142], %178 {strides = array<i32>} : memref<1x2x4x1x4x32xf32, #tpu.memory_space<vmem>>, vector<1x1x1x1x4x32xf32>,
    %c12_143 = arith.constant 12 : index
    %c0_144 = arith.constant 0 : index
    %179 = vector.load %arg12[%c12_143, %c0_144] : memref<32x32xf32, #tpu.memory_space<vmem>>, vector<4x32xf32>
    %c0_145 = arith.constant 0 : index
    %c0_146 = arith.constant 0 : index
    %c3_147 = arith.constant 3 : index
    %c0_148 = arith.constant 0 : index
    %c0_149 = arith.constant 0 : index
    %c0_150 = arith.constant 0 : index
    %180 = vector.load %arg11[%c0_145, %c0_146, %c3_147, %c0_148, %c0_149, %c0_150] : memref<1x2x4x1x4x32xf32, #tpu.memory_space<vmem>>, vector<1x1x1x1x4x32xf32>
    %181 = vector.shape_cast %180 : vector<1x1x1x1x4x32xf32> to vector<4x32xf32>
    %182 = vector.shape_cast %179 : vector<4x32xf32> to vector<1x1x1x1x4x32xf32>
    tpu.vector_store %arg11[%c0_145, %c0_146, %c3_147, %c0_148, %c0_149, %c0_150], %182 {strides = array<i32>} : memref<1x2x4x1x4x32xf32, #tpu.memory_space<vmem>>, vector<1x1x1x1x4x32xf32>,
    %c16_151 = arith.constant 16 : index
    %c0_152 = arith.constant 0 : index
    %183 = vector.load %arg12[%c16_151, %c0_152] : memref<32x32xf32, #tpu.memory_space<vmem>>, vector<4x32xf32>
    %c0_153 = arith.constant 0 : index
    %c1_154 = arith.constant 1 : index
    %c0_155 = arith.constant 0 : index
    %c0_156 = arith.constant 0 : index
    %c0_157 = arith.constant 0 : index
    %c0_158 = arith.constant 0 : index
    %184 = vector.load %arg11[%c0_153, %c1_154, %c0_155, %c0_156, %c0_157, %c0_158] : memref<1x2x4x1x4x32xf32, #tpu.memory_space<vmem>>, vector<1x1x1x1x4x32xf32>
    %185 = vector.shape_cast %184 : vector<1x1x1x1x4x32xf32> to vector<4x32xf32>
    %186 = vector.shape_cast %183 : vector<4x32xf32> to vector<1x1x1x1x4x32xf32>
    tpu.vector_store %arg11[%c0_153, %c1_154, %c0_155, %c0_156, %c0_157, %c0_158], %186 {strides = array<i32>} : memref<1x2x4x1x4x32xf32, #tpu.memory_space<vmem>>, vector<1x1x1x1x4x32xf32>,
    %c20_159 = arith.constant 20 : index
    %c0_160 = arith.constant 0 : index
    %187 = vector.load %arg12[%c20_159, %c0_160] : memref<32x32xf32, #tpu.memory_space<vmem>>, vector<4x32xf32>
    %c0_161 = arith.constant 0 : index
    %c1_162 = arith.constant 1 : index
    %c1_163 = arith.constant 1 : index
    %c0_164 = arith.constant 0 : index
    %c0_165 = arith.constant 0 : index
    %c0_166 = arith.constant 0 : index
    %188 = vector.load %arg11[%c0_161, %c1_162, %c1_163, %c0_164, %c0_165, %c0_166] : memref<1x2x4x1x4x32xf32, #tpu.memory_space<vmem>>, vector<1x1x1x1x4x32xf32>
    %189 = vector.shape_cast %188 : vector<1x1x1x1x4x32xf32> to vector<4x32xf32>
    %190 = vector.shape_cast %187 : vector<4x32xf32> to vector<1x1x1x1x4x32xf32>
    tpu.vector_store %arg11[%c0_161, %c1_162, %c1_163, %c0_164, %c0_165, %c0_166], %190 {strides = array<i32>} : memref<1x2x4x1x4x32xf32, #tpu.memory_space<vmem>>, vector<1x1x1x1x4x32xf32>,
    %c24_167 = arith.constant 24 : index
    %c0_168 = arith.constant 0 : index
    %191 = vector.load %arg12[%c24_167, %c0_168] : memref<32x32xf32, #tpu.memory_space<vmem>>, vector<4x32xf32>
    %c0_169 = arith.constant 0 : index
    %c1_170 = arith.constant 1 : index
    %c2_171 = arith.constant 2 : index
    %c0_172 = arith.constant 0 : index
    %c0_173 = arith.constant 0 : index
    %c0_174 = arith.constant 0 : index
    %192 = vector.load %arg11[%c0_169, %c1_170, %c2_171, %c0_172, %c0_173, %c0_174] : memref<1x2x4x1x4x32xf32, #tpu.memory_space<vmem>>, vector<1x1x1x1x4x32xf32>
    %193 = vector.shape_cast %192 : vector<1x1x1x1x4x32xf32> to vector<4x32xf32>
    %194 = vector.shape_cast %191 : vector<4x32xf32> to vector<1x1x1x1x4x32xf32>
    tpu.vector_store %arg11[%c0_169, %c1_170, %c2_171, %c0_172, %c0_173, %c0_174], %194 {strides = array<i32>} : memref<1x2x4x1x4x32xf32, #tpu.memory_space<vmem>>, vector<1x1x1x1x4x32xf32>,
    %c28_175 = arith.constant 28 : index
    %c0_176 = arith.constant 0 : index
    %195 = vector.load %arg12[%c28_175, %c0_176] : memref<32x32xf32, #tpu.memory_space<vmem>>, vector<4x32xf32>
    %c0_177 = arith.constant 0 : index
    %c1_178 = arith.constant 1 : index
    %c3_179 = arith.constant 3 : index
    %c0_180 = arith.constant 0 : index
    %c0_181 = arith.constant 0 : index
    %c0_182 = arith.constant 0 : index
    %196 = vector.load %arg11[%c0_177, %c1_178, %c3_179, %c0_180, %c0_181, %c0_182] : memref<1x2x4x1x4x32xf32, #tpu.memory_space<vmem>>, vector<1x1x1x1x4x32xf32>
    %197 = vector.shape_cast %196 : vector<1x1x1x1x4x32xf32> to vector<4x32xf32>
    %198 = vector.shape_cast %195 : vector<4x32xf32> to vector<1x1x1x1x4x32xf32>
    tpu.vector_store %arg11[%c0_177, %c1_178, %c3_179, %c0_180, %c0_181, %c0_182], %198 {strides = array<i32>} : memref<1x2x4x1x4x32xf32, #tpu.memory_space<vmem>>, vector<1x1x1x1x4x32xf32>,
    return
  }
  func.func @transform_0(%arg0: i32, %arg1: i32, %arg2: i32) -> (i32, i32, i32, i32, i32, i32) {
    %c0_i32 = arith.constant 0 : i32
    %c0_i32_0 = arith.constant 0 : i32
    %c0_i32_1 = arith.constant 0 : i32
    %c0_i32_2 = arith.constant 0 : i32
    return %arg0, %arg1, %c0_i32, %arg2, %c0_i32_0, %c0_i32_1 : i32, i32, i32, i32, i32, i32
  }
  func.func @transform_1(%arg0: i32, %arg1: i32, %arg2: i32) -> (i32, i32) {
    %c0_i32 = arith.constant 0 : i32
    %c0_i32_0 = arith.constant 0 : i32
    %c0_i32_1 = arith.constant 0 : i32
    return %c0_i32, %c0_i32_0 : i32, i32
  }
  func.func @transform_2(%arg0: i32, %arg1: i32, %arg2: i32) -> (i32, i32) {
    %c0_i32 = arith.constant 0 : i32
    %c0_i32_0 = arith.constant 0 : i32
    %c0_i32_1 = arith.constant 0 : i32
    return %c0_i32, %c0_i32_0 : i32, i32
  }
  func.func @transform_3(%arg0: i32, %arg1: i32, %arg2: i32) -> (i32, i32) {
    %c0_i32 = arith.constant 0 : i32
    %c0_i32_0 = arith.constant 0 : i32
    %c0_i32_1 = arith.constant 0 : i32
    return %c0_i32, %c0_i32_0 : i32, i32
  }
  func.func @transform_4(%arg0: i32, %arg1: i32, %arg2: i32) -> (i32, i32) {
    %c0_i32 = arith.constant 0 : i32
    %c0_i32_0 = arith.constant 0 : i32
    %c0_i32_1 = arith.constant 0 : i32
    return %c0_i32, %c0_i32_0 : i32, i32
  }
  func.func @transform_5(%arg0: i32, %arg1: i32, %arg2: i32) -> (i32, i32) {
    %c0_i32 = arith.constant 0 : i32
    %c0_i32_0 = arith.constant 0 : i32
    %c0_i32_1 = arith.constant 0 : i32
    return %c0_i32, %c0_i32_0 : i32, i32
  }
  func.func @transform_6(%arg0: i32, %arg1: i32, %arg2: i32) -> (i32, i32) {
    %c0_i32 = arith.constant 0 : i32
    %c0_i32_0 = arith.constant 0 : i32
    %c0_i32_1 = arith.constant 0 : i32
    return %c0_i32, %c0_i32_0 : i32, i32
  }
  func.func @transform_7(%arg0: i32, %arg1: i32, %arg2: i32) -> (i32, i32, i32) {
    %c0_i32 = arith.constant 0 : i32
    %c0_i32_0 = arith.constant 0 : i32
    %c0_i32_1 = arith.constant 0 : i32
    %c0_i32_2 = arith.constant 0 : i32
    return %c0_i32, %c0_i32_0, %c0_i32_1 : i32, i32, i32
  }
  func.func @transform_8(%arg0: i32, %arg1: i32, %arg2: i32) -> (i32, i32, i32, i32, i32, i32) {
    %c0_i32 = arith.constant 0 : i32
    %c0_i32_0 = arith.constant 0 : i32
    %c0_i32_1 = arith.constant 0 : i32
    %c0_i32_2 = arith.constant 0 : i32
    return %arg0, %arg1, %c0_i32, %arg2, %c0_i32_0, %c0_i32_1 : i32, i32, i32, i32, i32, i32
  }
}

</mosaic_0001>

<bundles_post_ra>
// kernel: tpu_custom_call.1
= control target key start
LH: loop header
LB: loop body
LE: loop exit
PB: predicated region body
PF: predicated region fallthrough
CT: control target
= control target key end

     0   :  { %s3211_s0 = inlined_call_operand.hbm [shape: f32[2,2,4,2,4,32], index: 0, kind: input, shape index: {}]   ;;  %s3212_s1 = inlined_call_operand.hbm [shape: f32[1,32], index: 1, kind: input, shape index: {}]   ;;  %s3213_s2 = inlined_call_operand.vmem [shape: f32[1,32], index: 2, kind: input, shape index: {}]   ;;  %s3214_s3 = inlined_call_operand.hbm [shape: f32[32,96], index: 3, kind: input, shape index: {}]   ;;  %s3215_s4 = inlined_call_operand.vmem [shape: f32[1,96], index: 4, kind: input, shape index: {}]   ;;  %s3216_s5 = inlined_call_operand.hbm [shape: f32[32,32], index: 5, kind: input, shape index: {}]   ;;  %s3217_s6 = inlined_call_operand.vmem [shape: f32[1,32], index: 6, kind: input, shape index: {}]   ;;  %s3218_s7 = inlined_call_operand.hbm [shape: f32[4,16,16], index: 7, kind: input, shape index: {}]   ;;  %s3219_s8 = inlined_call_operand.hbm [shape: f32[2,2,4,2,4,32], index: 8, kind: output, shape index: {}]  }
   0x1   :  { %3228 = sst [smem:[#allocation24_spill]] %s3212_s1 }
   0x2   :  { %3229 = sst [smem:[#allocation25_spill]] %s3214_s3 }
   0x3   :  { %3230 = sst [smem:[#allocation26_spill]] %s3216_s5 }
   0x4   :  { %3231 = sst [smem:[#allocation27_spill]] %s3218_s7 }
   0x5   :  { %3232 = sst [smem:[#allocation28_spill]] %s3219_s8 }
   0x6   :  { %13 = vsyncpa [#allocation5], 0 }
   0x7   :  { %15 = vsyncpa [#allocation5 + $0x1], 0 }
   0x8   :  { %16 = vsyncpa [#allocation8], 0 }
   0x9   :  { %17 = vsyncpa [#allocation11], 0 }
   0xa   :  { %18 = vsyncpa [#allocation6], 0 }
   0xb   :  { %20 = vsyncpa [#allocation6 + $0x1], 0  ;;  %s2592_s27 = smov 0   ;;  %s2594_s28 = smov 0  }
   0xc   :  { %s2596_s29 = smov 0   ;;  %s2598_s30 = smov 0  }
   0xd   :  { %s2600_s9 = smov 0   ;;  %s2602_s10 = smov 0  }
   0xe   :  { %s2604_s11 = smov 0   ;;  %s2606_s12 = smov 0  }
   0xf LB: > { %3233 = sst [smem:[#allocation18_spill]] %s2492_s27  ;;  %s1913_s13 = sadd.s32 4294967295, %s2520_s12   ;;  %s2520_s12 = sphi %s2606_s12, %s26_s12   ;;  %s2516_s11 = sphi %s2604_s11, %s3265_s11   ;;  %s2512_s10 = sphi %s2602_s10, %s3264_s10   ;;  %s2508_s9 = sphi %s2600_s9, %s3263_s9   ;;  %s2504_s30 = sphi %s2598_s30, %s3262_s30   ;;  %s2500_s29 = sphi %s2596_s29, %s3261_s29   ;;  %s2496_s28 = sphi %s2594_s28, %s3260_s28   ;;  %s2492_s27 = sphi %s2592_s27, %s3259_s27  }
  0x10   : > { %3234 = sst [smem:[#allocation19_spill]] %s2504_s30  ;;  %s1914_s14 = sadd.s32 4294967294, %s2520_s12  }
  0x11   : > { %p69_p0 = scmp.ne.s32.totalorder %s2496_s28, %s2492_s27  ;;  %p2636_p1 = scmp.eq.s32.totalorder %s1913_s13, 0 }
  0x12   : > { %p2640_p2 = scmp.eq.s32.totalorder %s1913_s13, 3  ;;  %p250_p3 = scmp.eq.s32.totalorder %s1914_s14, 3 }
  0x13   : > { %p2646_p4 = por %p2636_p1, %p69_p0  ;;  %p1915_p5 = scmp.ge.s32.totalorder %s2520_s12, 1 }
  0x14   : > { %p2651_p6 = por %p250_p3, %p69_p0  ;;  %p257_p7 = scmp.lt.s32.totalorder %s2520_s12, 5 }
  0x15   : > { %s3240_s1 = sld [smem:[#allocation24_spill]]  ;;  %s2522_s23 = smov [#allocation7]  }
  0x16   : > { %s3238_s18 = scalar_select %p2651_p6, 1, 0 }
  0x17   : > { %p2659_p8 = pnand %p1915_p5, %p257_p7  ;;  %s271_s24 = sshll.u32 %s2522_s23, 4  ;;  %s272_s24 = int_to_ptr.vmem [resolvable:$true] %s271_s24 }
  0x18   : > { %3239 = sst [smem:[#allocation20_spill]] %s3238_s18  ;;  %s2523_s19 = smov [#allocation10]  }
  0x19   : > { %p2026_p9 = pneg %p2659_p8  ;;  %s3243_s5 = sld [smem:[#allocation26_spill]] }
  0x1a   : > { %s302_s20 = sshll.u32 %s2523_s19, 4  ;;  %s3244_s3 = sld [smem:[#allocation25_spill]]  ;;  %s303_s20 = int_to_ptr.vmem [resolvable:$true] %s302_s20 }
  0x1b   : > { %s269_s21 = sshll.u32 %s3240_s1, 4  ;;  %p2667_p10 = pnand %p2026_p9, %p2636_p1  ;;  %s270_s21 = int_to_ptr.hbm [resolvable:$true] %s269_s21 }
  0x1c   : > { %s3222_s27 = smov 128   ;;  %s2525_s26 = smov 8  }
  0x1d   : > { %2029 = dma.hbm_to_vmem [thread:$0]  (!%p2667_p10), %s270_s21, 16, %s272_s24, [#allocation8]  }
  0x1e   : > { %s3245_s7 = sld [smem:[#allocation27_spill]]  ;;  %s2526_s13 = smov [#allocation9]  }
  0x1f   : > { %s300_s14 = sshll.u32 %s3243_s5, 4  ;;  %s285_s19 = sshll.u32 %s2526_s13, 4  ;;  %s301_s14 = int_to_ptr.hbm [resolvable:$true] %s300_s14  ;;  %s286_s19 = int_to_ptr.vmem [resolvable:$true] %s285_s19 }
  0x20   : > { %s283_s18 = sshll.u32 %s3244_s3, 4  ;;  %s2527_s23 = smov [#allocation12]   ;;  %s284_s18 = int_to_ptr.hbm [resolvable:$true] %s283_s18 }
  0x21   : > { %2035 = dma.hbm_to_vmem [thread:$0]  (!%p2667_p10), %s301_s14, 512, %s303_s20, [#allocation11], %s3222_s27, %s3222_s27, %s2525_s26  }
  0x22   : > { %2032 = dma.hbm_to_vmem [thread:$0]  (!%p2667_p10), %s284_s18, 512, %s286_s19, [#allocation8], %s3222_s27, %s3222_s27, %s2525_s26  }
  0x23   : > { %s319_s3 = sshll.u32 %s2527_s23, 4  ;;  %s38_s14 = sadd.s32 1, %s2512_s10  ;;  %s320_s3 = int_to_ptr.vmem [resolvable:$true] %s319_s3 }
  0x24   : > { %s317_s1 = sshll.u32 %s3245_s7, 4  ;;  %s45_s20 = sadd.s32 1, %s2516_s11  ;;  %s318_s1 = int_to_ptr.hbm [resolvable:$true] %s317_s1 }
  0x25   : > { %2038 = dma.hbm_to_vmem [thread:$0]  (!%p2667_p10), %s318_s1, 1024, %s320_s3, [#allocation11], %s3222_s27, %s3222_s27, %s2525_s26  }
  0x26   : > { %p39_p11 = scmp.ge.s32.totalorder %s38_s14, 2  ;;  %s56_s21 = sadd.s32 1, %s2500_s29 }
  0x27   : > { %p63_p12 = scmp.ne.s32.totalorder %s2500_s29, %s2496_s28  ;;  %p64_p13 = scmp.eq.s32.totalorder %s2520_s12, 0 }
  0x28   : > { %s3267_s14 = smov (%p39_p11, %s38_s14), 0  ;;  %s3269_s20 = smov (!%p39_p11, %s45_s20), %s2516_s11 }
  0x29   : > { %3246 = sst [smem:[#allocation21_spill]] %s3267_s14  ;;  %s52_s18 = ssub.s32 %s2512_s10, %s3267_s14 }
  0x2a   : > { %p2705_p0 = por %p64_p13, %p63_p12  ;;  %p47_p3 = scmp.ge.s32.totalorder %s3269_s20, 2 }
  0x2b   : > { %p2711_p5 = por %p2640_p2, %p63_p12  ;;  %p2051_p7 = scmp.lt.s32.totalorder %s2520_s12, 4 }
  0x2c   : > { %s333_s26 = sand.u32 1, %s2500_s29   ;;  %s3271_s20 = smov (%p47_p3, %s3269_s20), 0 }
  0x2d   : > { %s3248_s3 = scalar_select %p2711_p5, 1, 0 }
  0x2e   : > { %3250 = sst [smem:[#allocation23_spill]] %s3271_s20  ;;  %s1921_s24 = sshll.u32 %s333_s26, 5 }
  0x2f   : > { %3249 = sst [smem:[#allocation22_spill]] %s3248_s3  ;;  %s49_s1 = ssub.s32 %s2516_s11, %s3271_s20 }
  0x30   : > { %s53_s13 = sor.u32 %s52_s18, %s49_s1  ;;  %s1922_s19 = sshll.u32 %s2516_s11, 4 }
  0x31   : > { %p54_p9 = scmp.eq.s32.totalorder %s53_s13, 0  ;;  %s344_s23 = sadd.s32 %s2512_s10, %s1922_s19 }
  0x32   : > { %s1923_s27 = sshll.u32 %s344_s23, 2  ;;  %s337_s5 = scalar_lea.vmem [#allocation4], %s1921_s24 }
  0x33   : > { %s349_s16 = sshll.u32 %s337_s5, 4  ;;  %s346_s3 = scalar_lea.hbm %s3211_s0, %s1923_s27  ;;  %s350_s16 = int_to_ptr.vmem [resolvable:$true] %s349_s16 }
  0x34   : > { %s2724_s7 = scalar_select %p54_p9, %s2500_s29, %s56_s21  }
  0x35   : > { %s347_s30 = sshll.u32 %s346_s3, 4  ;;  %p2040_p2 = pnand %p2051_p7, %p2705_p0  ;;  %s348_s30 = int_to_ptr.hbm [resolvable:$true] %s347_s30 }
  0x36   : > { %s334_s20 = scalar_lea.sflag [#allocation5], %s333_s26  ;;  %s2528_s18 = smov 64  }
  0x37   : > { %s2529_s1 = smov 4   ;;  %s3251_s13 = smov 128  }
  0x38   : > { %2042 = dma.hbm_to_vmem [thread:$0]  (!%p2040_p2), %s348_s30, 512, %s350_s16, %s334_s20, %s3251_s13, %s2528_s18, %s2529_s1  }
  0x39   : > { %361 = sbr.rel (%p2659_p8) target bundleno = 1605 (0x645), region = 52  ;;  %s2737_s5 = sand.u32 (!%p2659_p8), 1, %s2496_s28  }
  0x3a   : > { %s1925_s8 = sshll.u32 (!%p2659_p8), %s2737_s5, 5  ;;  %s364_s27 = scalar_lea.sflag (!%p2659_p8), [#allocation5], %s2737_s5 }
  0x3b   : > { %s367_s14 = scalar_lea.vmem (!%p2659_p8), [#allocation4], %s1925_s8 }
  0x3e   : > { %2475 = dma.done.wait (%p2646_p4), %s364_s27, 512  }
  0x3f   : > { %2477 = vsyncadd (%p2646_p4), %s364_s27, 4294966784 }
  0x40   : > { %2479 = dma.done.wait (%p2636_p1), [#allocation8], 528  }
  0x41   : > { %2481 = vsyncadd (%p2636_p1), [#allocation8], 4294966768 }
  0x42   : > { %2483 = dma.done.wait (%p2636_p1), [#allocation11], 1536  }
  0x43   : > { %2485 = vsyncadd (%p2636_p1), [#allocation11], 4294965760  ;;  %vm424_vm0 = vcmask 257024   ;;  %v1934_v0 = vld [vmem:[%s367_s14 + $0x10] sm:$0xf]  ;;  %vm451_vm1 = vcmask 261120  }
  0x44   : > { %v1935_v1 = vld [vmem:[%s367_s14 + $0x14] sm:$0xf]  ;;  %v423_v2 = vld [vmem:[%s367_s14] sm:$0xf]  ;;  %437 = vst.msk [vmem:[#allocation2 + $0x10] sm:$0xf] %vm424_vm0, %v1934_v0 }
  0x45   : > { %v1931_v3 = vld [vmem:[%s367_s14 + $0x4] sm:$0xf]  ;;  %440 = vst.msk [vmem:[#allocation2 + $0x14] sm:$0xf] %vm424_vm0, %v1935_v1  ;;  %v1936_v4 = vld [vmem:[%s367_s14 + $0x18] sm:$0xf] }
  0x46   : > { %425 = vst.msk [vmem:[#allocation2] sm:$0xf] %vm424_vm0, %v423_v2  ;;  %v1937_v5 = vld [vmem:[%s367_s14 + $0x1c] sm:$0xf]  ;;  %v1932_v6 = vld [vmem:[%s367_s14 + $0x8] sm:$0xf] }
  0x47   : > { %428 = vst.msk [vmem:[#allocation2 + $0x4] sm:$0xf] %vm424_vm0, %v1931_v3  ;;  %v1933_v7 = vld [vmem:[%s367_s14 + $0xc] sm:$0xf]  ;;  %v2530_v16 = vmov 32.0   ;;  %v566_v43 = vld [vmem:[#allocation9 + $0x18] sm:$0xff] }
  0x48   : > { %443 = vst.msk [vmem:[#allocation2 + $0x18] sm:$0xf] %vm424_vm0, %v1936_v4  ;;  %2190 = vrcp.f32 %v2530_v16  ;;  %595 = vmatpush.msra.mxu0 %v566_v43  ;;  %v565_v44 = vld [vmem:[#allocation9 + $0x10] sm:$0xff]  ;;  %v564_v45 = vld [vmem:[#allocation9 + $0x8] sm:$0xff]  ;;  %v563_v46 = vld [vmem:[#allocation9] sm:$0xff]  ;;  %s2531_s20 = smov 96  }
  0x49   : > { %446 = vst.msk [vmem:[#allocation2 + $0x1c] sm:$0xf] %vm424_vm0, %v1937_v5  ;;  %s2532_s21 = smov 88   ;;  %s2533_s25 = smov 120   ;;  %vm624_vm15 = vcmask 64512  }
  0x4a   : > { %431 = vst.msk [vmem:[#allocation2 + $0x8] sm:$0xf] %vm424_vm0, %v1932_v6  ;;  %596 = vmatpush.msra.mxu0 %v565_v44  ;;  %s2534_s3 = smov 112   ;;  %s2535_s26 = smov 80  }
  0x4b   : > { %434 = vst.msk [vmem:[#allocation2 + $0xc] sm:$0xf] %vm424_vm0, %v1933_v7  ;;  %s2536_s24 = smov 72   ;;  %s2537_s19 = smov 104  }
  0x4c   : > { %v449_v8 = vld [vmem:[#allocation2 + $0x10] sm:$0xff]  ;;  %597 = vmatpush.msra.mxu0 %v564_v45  ;;  %s2538_s23 = smov 64   ;;  %s2539_s16 = smov 48  }
  0x4d   : > { %v458_v9 = vsel %vm451_vm1, %v449_v8, 0.0  ;;  %s2540_s18 = smov 56   ;;  %s2541_s1 = smov 40  }
  0x4e   : > { %459 = vadd.xlane.f32.xlu1 %v458_v9  ;;  %v447_v10 = vld [vmem:[#allocation2] sm:$0xff]  ;;  %v2191_v17 = vpop.eup %2190  ;;  %598 = vmatpush.msra.mxu0 %v563_v46  ;;  %s2542_s13 = smov 8   ;;  %s2543_s27 = smov 16  }
  0x4f   : > { %v452_v11 = vsel %vm451_vm1, %v447_v10, 0.0  ;;  %v465_v18 = vmul.f32 32.0, %v2191_v17  ;;  %vm469_vm2 = vweird.f32 %v2191_v17  ;;  %v2186_v9 = vld [vmem:[#allocation7] ss:$0 sm:$0xff]  ;;  %s2544_s14 = smov 24   ;;  %s3144_s17 = scalar_lea.vmem [#allocation13], %s1925_s8 }
  0x50   : > { %453 = vadd.xlane.f32.xlu0 %v452_v11  ;;  %v450_v12 = vld [vmem:[#allocation2 + $0x18] sm:$0xff]  ;;  %s3252_s22 = sld [smem:[#allocation19_spill]]  ;;  %s2002_s8 = sshll.u32 %s2508_s9, 4 }
  0x51   : > { %v461_v14 = vsel %vm451_vm1, %v450_v12, 0.0  ;;  %v466_v19 = vsub.f32 1.0, %v465_v18 }
  0x52   : > { %v448_v13 = vld [vmem:[#allocation2 + $0x8] sm:$0xff] }
  0x53   : > { %v455_v15 = vsel %vm451_vm1, %v448_v13, 0.0  ;;  %v467_v20 = vmul.f32 %v2191_v17, %v466_v19 }
  0x55   : > { %v468_v21 = vadd.f32 %v2191_v17, %v467_v20 }
  0x56   : > { %462 = vadd.xlane.f32.xlu1 %v461_v14 }
  0x57   : > { %v470_v22 = vsel %vm469_vm2, %v2191_v17, %v468_v21  ;;  %vm697_vm2 = vcmask 130048  }
  0x58   : > { %456 = vadd.xlane.f32.xlu0 %v455_v15 }
  0xc1   : > { %v460_v23 = vpop.xlane.xlu1 %459 }
  0xc2   : > { %v473_v24 = vmul.f32 %v470_v22, %v460_v23 }
  0xc3   : > { %v454_v25 = vpop.xlane.xlu0 %453 }
  0xc4   : > { %v2767_v26 = vsub.f32 %v449_v8, %v473_v24  ;;  %v471_v27 = vmul.f32 %v470_v22, %v454_v25 }
  0xc6   : > { %v2769_v28 = vsub.f32 %v447_v10, %v471_v27  ;;  %v481_v29 = vmul.f32 %v2767_v26, %v2767_v26 }
  0xc8   : > { %v489_v30 = vsel %vm451_vm1, %v481_v29, 0.0  ;;  %v479_v31 = vmul.f32 %v2769_v28, %v2769_v28 }
  0xc9   : > { %v463_v32 = vpop.xlane.xlu1 %462  ;;  %490 = vadd.xlane.f32.xlu0 %v489_v30 }
  0xca   : > { %v474_v33 = vmul.f32 %v470_v22, %v463_v32  ;;  %v483_v34 = vsel %vm451_vm1, %v479_v31, 0.0 }
  0xcb   : > { %484 = vadd.xlane.f32.xlu2 %v483_v34  ;;  %v457_v35 = vpop.xlane.xlu0 %456 }
  0xcc   : > { %v2777_v36 = vsub.f32 %v450_v12, %v474_v33  ;;  %v472_v37 = vmul.f32 %v470_v22, %v457_v35 }
  0xce   : > { %v2779_v38 = vsub.f32 %v448_v13, %v472_v37  ;;  %v482_v39 = vmul.f32 %v2777_v36, %v2777_v36  ;;  %v2187_v13 = vld [vmem:[%s3213_s2] ss:$0 sm:$0xff] }
  0xd0   : > { %v492_v40 = vsel %vm451_vm1, %v482_v39, 0.0  ;;  %v480_v41 = vmul.f32 %v2779_v38, %v2779_v38  ;;  %v2188_v39 = vld [vmem:[%s3215_s4] ss:$0 sm:$0xff] }
  0xd1   : > { %493 = vadd.xlane.f32.xlu1 %v492_v40 }
  0xd2   : > { %v486_v42 = vsel %vm451_vm1, %v480_v41, 0.0 }
  0xd3   : > { %487 = vadd.xlane.f32.xlu2 %v486_v42 }
 0x13c   : > { %v491_v47 = vpop.xlane.xlu0 %490 }
 0x13d   : > { %v497_v48 = vmul.f32 %v491_v47, %v470_v22 }
 0x13e   : > { %v485_v49 = vpop.xlane.xlu2 %484 }
 0x13f   : > { %v495_v50 = vmul.f32 %v485_v49, %v470_v22  ;;  %v501_v51 = vadd.f32 1e-05, %v497_v48 }
 0x141   : > { %v499_v52 = vadd.f32 1e-05, %v495_v50  ;;  %2192 = vrsqrt.f32 %v501_v51  ;;  %vm529_vm6 = vweird.f32 %v501_v51 }
 0x143   : > { %2194 = vrsqrt.f32 %v499_v52  ;;  %vm509_vm4 = vweird.f32 %v499_v52 }
 0x144   : > { %v494_v53 = vpop.xlane.xlu1 %493 }
 0x145   : > { %v498_v54 = vmul.f32 %v494_v53, %v470_v22 }
 0x146   : > { %v488_v55 = vpop.xlane.xlu2 %487 }
 0x147   : > { %v2193_v56 = vpop.eup %2192  ;;  %v502_v57 = vadd.f32 1e-05, %v498_v54  ;;  %v496_v58 = vmul.f32 %v488_v55, %v470_v22 }
 0x148   : > { %v524_v62 = vmul.f32 %v2193_v56, %v501_v51  ;;  %vm530_vm7 = vweird.f32 %v2193_v56 }
 0x149   : > { %v2195_v59 = vpop.eup %2194  ;;  %2196 = vrsqrt.f32 %v502_v57  ;;  %v500_v60 = vadd.f32 1e-05, %v496_v58  ;;  %vm531_vm9 = vmor %vm529_vm6, %vm530_vm7  ;;  %vm539_vm12 = vweird.f32 %v502_v57 }
 0x14a   : > { %v504_v61 = vmul.f32 %v2195_v59, %v499_v52  ;;  %v525_v1 = vmul.f32 %v2193_v56, %v524_v62  ;;  %vm510_vm3 = vweird.f32 %v2195_v59 }
 0x14b   : > { %2198 = vrsqrt.f32 %v500_v60  ;;  %vm511_vm5 = vmor %vm509_vm4, %vm510_vm3  ;;  %vm519_vm10 = vweird.f32 %v500_v60 }
 0x14c   : > { %v505_v63 = vmul.f32 %v2195_v59, %v504_v61  ;;  %v526_v6 = vmul.f32 0.5, %v525_v1 }
 0x14e   : > { %v506_v0 = vmul.f32 0.5, %v505_v63  ;;  %v527_v14 = vsub.f32 1.5, %v526_v6 }
 0x14f   : > { %v2197_v2 = vpop.eup %2196 }
 0x150   : > { %v507_v3 = vsub.f32 1.5, %v506_v0  ;;  %v534_v7 = vmul.f32 %v2197_v2, %v502_v57  ;;  %v528_v20 = vmul.f32 %v2193_v56, %v527_v14  ;;  %vm540_vm13 = vweird.f32 %v2197_v2 }
 0x151   : > { %v2199_v4 = vpop.eup %2198  ;;  %vm541_vm14 = vmor %vm539_vm12, %vm540_vm13 }
 0x152   : > { %v508_v5 = vmul.f32 %v2195_v59, %v507_v3  ;;  %v514_v8 = vmul.f32 %v2199_v4, %v500_v60  ;;  %v535_v15 = vmul.f32 %v2197_v2, %v534_v7  ;;  %vm520_vm8 = vweird.f32 %v2199_v4 }
 0x153   : > { %vm521_vm11 = vmor %vm519_vm10, %vm520_vm8  ;;  %v532_v25 = vsel %vm531_vm9, %v2193_v56, %v528_v20 }
 0x154   : > { %v512_v10 = vsel %vm511_vm5, %v2195_v59, %v508_v5  ;;  %v515_v11 = vmul.f32 %v2199_v4, %v514_v8  ;;  %v536_v21 = vmul.f32 0.5, %v535_v15  ;;  %v545_v30 = vmul.f32 %v532_v25, %v2767_v26  ;;  %v617_v25 = vld [vmem:[#allocation12 + $0x8] sm:$0xff] }
 0x155   : > { %v543_v12 = vmul.f32 %v512_v10, %v2769_v28 }
 0x156   : > { %v516_v16 = vmul.f32 0.5, %v515_v11  ;;  %v537_v27 = vsub.f32 1.5, %v536_v21  ;;  %v553_v32 = vmul.f32 %v2186_v9, %v545_v30  ;;  %v869_v21 = vld [vmem:[#allocation12 + $0x10] sm:$0xff] }
 0x157   : > { %v551_v17 = vmul.f32 %v2186_v9, %v543_v12 }
 0x158   : > { %v517_v18 = vsub.f32 1.5, %v516_v16  ;;  %v538_v31 = vmul.f32 %v2197_v2, %v537_v27  ;;  %v561_v34 = vadd.f32 %v2187_v13, %v553_v32  ;;  %v616_v16 = vld [vmem:[#allocation12] sm:$0xff] }
 0x159   : > { %v559_v19 = vadd.f32 %v2187_v13, %v551_v17 }
 0x15a   : > { %v518_v22 = vmul.f32 %v2199_v4, %v517_v18  ;;  %v542_v33 = vsel %vm541_vm14, %v2197_v2, %v538_v31 }
 0x15b   : > { %1938 = vmatmul.msk.f32.vlgmr.msra.gmra.mxu0 %vm451_vm1, %v559_v19  ;;  %v546_v35 = vmul.f32 %v542_v33, %v2777_v36 }
 0x15c   : > { %v522_v23 = vsel %vm521_vm11, %v2199_v4, %v518_v22 }
 0x15d   : > { %v544_v24 = vmul.f32 %v522_v23, %v2779_v38  ;;  %v554_v37 = vmul.f32 %v2186_v9, %v546_v35 }
 0x15f   : > { %v552_v28 = vmul.f32 %v2186_v9, %v544_v24  ;;  %v562_v38 = vadd.f32 %v2187_v13, %v554_v37 }
 0x161   : > { %v560_v29 = vadd.f32 %v2187_v13, %v552_v28  ;;  %v870_v28 = vld [vmem:[#allocation12 + $0x18] sm:$0xff] }
 0x163   : > { %1939 = vmatmul.msk.f32.gmra.mxu0 %vm451_vm1, %v560_v29 }
 0x16b   : > { %1940 = vmatmul.msk.f32.gmra.mxu0 %vm451_vm1, %v561_v34  ;;  %v1137_v34 = vld [vmem:[#allocation12 + $0x20] sm:$0xff] }
 0x173   : > { %1941 = vmatmul.msk.f32.gmra.mxu0 %vm451_vm1, %v562_v38 }
 0x1d8   : > { %v600_v26 = vpop.f32.mrf.mxu0 }
 0x1d9   : > { %v601_v40 = vadd.f32 %v2188_v39, %v600_v26 }
 0x1db   : > { %620 = vrot.lane.b32.xlu0 %v601_v40, %s2531_s20  ;;  %v612_v49 = vmul.f32 0.35355338, %v601_v40 }
 0x1e0   : > { %v603_v41 = vpop.f32.mrf.mxu0 }
 0x1e1   : > { %v604_v42 = vadd.f32 %v2188_v39, %v603_v41  ;;  %v1138_v41 = vld [vmem:[#allocation12 + $0x28] sm:$0xff] }
 0x1e3   : > { %877 = vrot.lane.b32.xlu0 %v604_v42, %s2532_s21  ;;  %622 = vrot.lane.b32.xlu2 %v604_v42, %s2531_s20  ;;  %v2801_v36 = vpack.i.bf16 %v601_v40, %v604_v42  ;;  %v613_v45 = vmul.f32 0.35355338, %v604_v42 }
 0x1e8   : > { %v606_v43 = vpop.f32.mrf.mxu0 }
 0x1e9   : > { %v607_v44 = vadd.f32 %v2188_v39, %v606_v43 }
 0x1eb   : > { %873 = vrot.lane.b32.xlu0 %v613_v45, %s2533_s25  ;;  %660 = vrot.lane.b32.xlu2 %v607_v44, %s2531_s20  ;;  %v614_v50 = vmul.f32 0.35355338, %v607_v44 }
 0x1f0   : > { %v609_v46 = vpop.f32.mrf.mxu0 }
 0x1f1   : > { %v610_v47 = vadd.f32 %v2188_v39, %v609_v46 }
 0x1f3   : > { %662 = vrot.lane.b32.xlu1 %v610_v47, %s2531_s20  ;;  %914 = vrot.lane.b32.xlu0 %v607_v44, %s2532_s21  ;;  %v2803_v48 = vpack.i.bf16 %v607_v44, %v610_v47  ;;  %v615_v51 = vmul.f32 0.35355338, %v610_v47  ;;  %s1774_s20 = sadd.s32 %s3252_s22, %s2002_s8 }
 0x1f4   : > { %875 = vrot.lane.b32.xlu2 %v601_v40, %s2532_s21 }
 0x1fb   : > { %871 = vrot.lane.b32.xlu1 %v612_v49, %s2533_s25  ;;  %1139 = vrot.lane.b32.xlu0 %v612_v49, %s2534_s3 }
 0x1fc   : > { %1143 = vrot.lane.b32.xlu2 %v601_v40, %s2535_s26 }
 0x203   : > { %1145 = vrot.lane.b32.xlu1 %v604_v42, %s2535_s26  ;;  %1411 = vrot.lane.b32.xlu0 %v601_v40, %s2536_s24 }
 0x204   : > { %916 = vrot.lane.b32.xlu2 %v610_v47, %s2532_s21  ;;  %s2003_s21 = sshll.u32 %s1774_s20, 2 }
 0x20b   : > { %1184 = vrot.lane.b32.xlu0 %v610_v47, %s2535_s26  ;;  %910 = vrot.lane.b32.xlu1 %v614_v50, %s2533_s25 }
 0x20c   : > { %1413 = vrot.lane.b32.xlu2 %v604_v42, %s2536_s24 }
 0x213   : > { %1450 = vrot.lane.b32.xlu0 %v607_v44, %s2536_s24  ;;  %1141 = vrot.lane.b32.xlu1 %v613_v45, %s2534_s3 }
 0x214   : > { %912 = vrot.lane.b32.xlu2 %v615_v51, %s2533_s25 }
 0x21b   : > { %1180 = vrot.lane.b32.xlu0 %v615_v51, %s2534_s3  ;;  %1182 = vrot.lane.b32.xlu1 %v607_v44, %s2535_s26  ;;  %s3254_s26 = sld [smem:[#allocation28_spill]] }
 0x21c   : > { %1178 = vrot.lane.b32.xlu2 %v614_v50, %s2534_s3 }
 0x221   : > { %s2434_s30 = scalar_lea.hbm %s3254_s26, 128 }
 0x223   : > { %1407 = vrot.lane.b32.xlu1 %v612_v49, %s2537_s19 }
 0x224   : > { %1409 = vrot.lane.b32.xlu2 %v613_v45, %s2537_s19 }
 0x22b   : > { %1452 = vrot.lane.b32.xlu1 %v610_v47, %s2536_s24  ;;  %s1776_s24 = scalar_lea.hbm %s3254_s26, %s2003_s21 }
 0x22c   : > { %1446 = vrot.lane.b32.xlu2 %v614_v50, %s2537_s19 }
 0x233   : > { %1448 = vrot.lane.b32.xlu1 %v615_v51, %s2537_s19  ;;  %s1777_s19 = sshll.u32 %s3144_s17, 4  ;;  %s1778_s19 = int_to_ptr.vmem [resolvable:$true] %s1777_s19 }
 0x23d   : > { %v623_v52 = vpop.permute.xlu2 %622 }
 0x23e   : > { %1942 = vmatpush.xpose.msk.msra.mxu2 %vm624_vm15, %v623_v52 }
 0x245   : > { %v661_v53 = vpop.permute.xlu2 %660 }
 0x24d   : > { %v621_v54 = vpop.permute.xlu0 %620 }
 0x24e   : > { %1943 = vmatpush.xpose.msk.msra.mxu2 %vm624_vm15, %v621_v54  ;;  %v876_v56 = vpop.permute.xlu2 %875 }
 0x251   : > { %1944 = vmatmul.msk.f32.vlgmr.msra.gmra.mxu2 %vm624_vm15, %v612_v49 }
 0x255   : > { %v878_v55 = vpop.permute.xlu0 %877 }
 0x256   : > { %1954 = vmatpush.xpose.msk.msra.mxu1 %vm624_vm15, %v878_v55  ;;  %v1144_v58 = vpop.permute.xlu2 %1143 }
 0x259   : > { %1945 = vmatmul.msk.f32.gmra.mxu2 %vm624_vm15, %v613_v45 }
 0x25a   : > { %1955 = vmatpush.xpose.msk.msra.mxu1 %vm624_vm15, %v876_v56 }
 0x25d   : > { %v874_v57 = vpop.permute.xlu0 %873 }
 0x25e   : > { %v917_v61 = vpop.permute.xlu2 %916 }
 0x265   : > { %v663_v59 = vpop.permute.xlu1 %662  ;;  %v915_v60 = vpop.permute.xlu0 %914 }
 0x266   : > { %1946 = vmatpush.xpose.msk.msrb.mxu2 %vm624_vm15, %v663_v59  ;;  %v1414_v2 = vpop.permute.xlu2 %1413  ;;  %v1406_v59 = vld [vmem:[#allocation12 + $0x38] sm:$0xff] }
 0x26a   : > { %1947 = vmatpush.xpose.msk.msrb.mxu2 %vm624_vm15, %v661_v53 }
 0x26d   : > { %v872_v62 = vpop.permute.xlu1 %871  ;;  %1948 = vmatmul.msk.f32.vlgmr.msrb.gmra.mxu2 %vm624_vm15, %v614_v50  ;;  %v1140_v63 = vpop.permute.xlu0 %1139  ;;  %v1405_v50 = vld [vmem:[#allocation12 + $0x30] sm:$0xff] }
 0x26e   : > { %1958 = vmatpush.xpose.msk.msra.mxu2 %vm624_vm15, %v917_v61  ;;  %1956 = vmatmul.msk.f32.vlgmr.msra.gmra.mxu1 %vm624_vm15, %v872_v62  ;;  %v913_v5 = vpop.permute.xlu2 %912 }
 0x272   : > { %1959 = vmatpush.xpose.msk.msra.mxu2 %vm624_vm15, %v915_v60 }
 0x275   : > { %v1146_v0 = vpop.permute.xlu1 %1145  ;;  %1949 = vmatmul.msk.f32.gmra.mxu2 %vm624_vm15, %v615_v51  ;;  %v1412_v1 = vpop.permute.xlu0 %1411 }
 0x276   : > { %1957 = vmatmul.msk.f32.gmra.mxu1 %vm624_vm15, %v874_v57  ;;  %v1179_v9 = vpop.permute.xlu2 %1178 }
 0x277   : > { %1966 = vmatpush.xpose.msk.msrb.mxu1 %vm624_vm15, %v1146_v0 }
 0x27b   : > { %1967 = vmatpush.xpose.msk.msrb.mxu1 %vm624_vm15, %v1144_v58 }
 0x27d   : > { %v911_v3 = vpop.permute.xlu1 %910  ;;  %v1185_v4 = vpop.permute.xlu0 %1184 }
 0x27e   : > { %1960 = vmatmul.msk.f32.vlgmr.msra.gmra.mxu2 %vm624_vm15, %v911_v3  ;;  %1968 = vmatmul.msk.f32.vlgmr.msrb.gmra.mxu1 %vm624_vm15, %v1140_v63  ;;  %v1410_v12 = vpop.permute.xlu2 %1409 }
 0x27f   : > { %1978 = vmatpush.xpose.msk.msra.mxu1 %vm624_vm15, %v1414_v2  ;;  %1970 = vmatpush.xpose.msk.msrb.mxu2 %vm624_vm15, %v1185_v4 }
 0x283   : > { %1979 = vmatpush.xpose.msk.msra.mxu1 %vm624_vm15, %v1412_v1 }
 0x285   : > { %v1142_v6 = vpop.permute.xlu1 %1141  ;;  %v1451_v8 = vpop.permute.xlu0 %1450 }
 0x286   : > { %1961 = vmatmul.msk.f32.gmra.mxu2 %vm624_vm15, %v913_v5  ;;  %1969 = vmatmul.msk.f32.gmra.mxu1 %vm624_vm15, %v1142_v6  ;;  %v1447_v14 = vpop.permute.xlu2 %1446 }
 0x28d   : > { %v1183_v7 = vpop.permute.xlu1 %1182  ;;  %v1181_v11 = vpop.permute.xlu0 %1180 }
 0x28e   : > { %1971 = vmatpush.xpose.msk.msrb.mxu2 %vm624_vm15, %v1183_v7 }
 0x291   : > { %1972 = vmatmul.msk.f32.vlgmr.msrb.gmra.mxu2 %vm624_vm15, %v1179_v9 }
 0x295   : > { %v1408_v10 = vpop.permute.xlu1 %1407 }
 0x296   : > { %1980 = vmatmul.msk.f32.vlgmr.msra.gmra.mxu1 %vm624_vm15, %v1408_v10 }
 0x299   : > { %1973 = vmatmul.msk.f32.gmra.mxu2 %vm624_vm15, %v1181_v11 }
 0x29d   : > { %v1453_v13 = vpop.permute.xlu1 %1452 }
 0x29e   : > { %1981 = vmatmul.msk.f32.gmra.mxu1 %vm624_vm15, %v1410_v12  ;;  %1982 = vmatpush.xpose.msk.msra.mxu2 %vm624_vm15, %v1453_v13 }
 0x2a2   : > { %1983 = vmatpush.xpose.msk.msra.mxu2 %vm624_vm15, %v1451_v8 }
 0x2a5   : > { %1984 = vmatmul.msk.f32.vlgmr.msra.gmra.mxu2 %vm624_vm15, %v1447_v14  ;;  %v1449_v15 = vpop.permute.xlu1 %1448 }
 0x2ad   : > { %1985 = vmatmul.msk.f32.gmra.mxu2 %vm624_vm15, %v1449_v15 }
 0x2d4   : > { %v652_v17 = vpop.f32.mrf.mxu2 }
 0x2d5   : > { %v2837_v18 = vadd.f32 %v652_v17, %v616_v16 }
 0x2d7   : > { %v698_v19 = vsel %vm697_vm2, %v2837_v18, -inf }
 0x2d8   : > { %699 = vmax.xlane.f32.xlu0 %v698_v19 }
 0x2dc   : > { %v655_v20 = vpop.f32.mrf.mxu2 }
 0x2dd   : > { %v2845_v29 = vadd.f32 %v655_v20, %v617_v25 }
 0x2df   : > { %v701_v32 = vsel %vm697_vm2, %v2845_v29, -inf }
 0x2eb   : > { %v904_v22 = vpop.f32.mrf.mxu1 }
 0x2ec   : > { %v2841_v23 = vadd.f32 %v904_v22, %v869_v21 }
 0x2ee   : > { %v949_v24 = vsel %vm697_vm2, %v2841_v23, -inf }
 0x2ef   : > { %950 = vmax.xlane.f32.xlu2 %v949_v24 }
 0x2f0   : > { %v691_v27 = vpop.f32.mrf.mxu2 }
 0x2f1   : > { %v2853_v35 = vadd.f32 %v691_v27, %v616_v16 }
 0x2f3   : > { %v907_v30 = vpop.f32.mrf.mxu1  ;;  %v704_v26 = vsel %vm697_vm2, %v2853_v35, -inf }
 0x2f4   : > { %v2847_v31 = vadd.f32 %v907_v30, %v870_v28 }
 0x2f6   : > { %v952_v33 = vsel %vm697_vm2, %v2847_v31, -inf }
 0x2f7   : > { %702 = vmax.xlane.f32.xlu2 %v701_v32  ;;  %953 = vmax.xlane.f32.xlu1 %v952_v33 }
 0x2f8   : > { %v694_v37 = vpop.f32.mrf.mxu2 }
 0x2f9   : > { %v2865_v46 = vadd.f32 %v694_v37, %v617_v25 }
 0x2fb   : > { %v1172_v38 = vpop.f32.mrf.mxu1  ;;  %v707_v49 = vsel %vm697_vm2, %v2865_v46, -inf }
 0x2fc   : > { %v2855_v39 = vadd.f32 %v1172_v38, %v1137_v34 }
 0x2fe   : > { %v1217_v40 = vsel %vm697_vm2, %v2855_v39, -inf }
 0x2ff   : > { %705 = vmax.xlane.f32.xlu1 %v704_v26  ;;  %1218 = vmax.xlane.f32.xlu0 %v1217_v40 }
 0x301   : > { %v943_v43 = vpop.f32.mrf.mxu2 }
 0x302   : > { %v2891_v3 = vadd.f32 %v943_v43, %v869_v21 }
 0x303   : > { %v1175_v42 = vpop.f32.mrf.mxu1 }
 0x304   : > { %v2861_v44 = vadd.f32 %v1175_v42, %v1138_v41  ;;  %v955_v5 = vsel %vm697_vm2, %v2891_v3, -inf }
 0x306   : > { %v1220_v45 = vsel %vm697_vm2, %v2861_v44, -inf }
 0x307   : > { %1221 = vmax.xlane.f32.xlu0 %v1220_v45 }
 0x309   : > { %v946_v47 = vpop.f32.mrf.mxu2 }
 0x30a   : > { %v2897_v6 = vadd.f32 %v946_v47, %v870_v28 }
 0x30c   : > { %v958_v7 = vsel %vm697_vm2, %v2897_v6, -inf }
 0x30f   : > { %2152 = vrot.lane.b32.xlu2 %v2803_v48, %s2538_s23  ;;  %708 = vmax.xlane.f32.xlu0 %v707_v49 }
 0x313   : > { %v1440_v51 = vpop.f32.mrf.mxu1 }
 0x314   : > { %v2871_v52 = vadd.f32 %v1440_v51, %v1405_v50  ;;  %v1211_v53 = vpop.f32.mrf.mxu2 }
 0x315   : > { %v2877_v55 = vadd.f32 %v1211_v53, %v1137_v34 }
 0x316   : > { %v1485_v54 = vsel %vm697_vm2, %v2871_v52, -inf }
 0x317   : > { %1486 = vmax.xlane.f32.xlu0 %v1485_v54  ;;  %v1223_v56 = vsel %vm697_vm2, %v2877_v55, -inf }
 0x318   : > { %2147 = vrot.lane.b32.xlu1 %v2801_v36, %s2538_s23 }
 0x31b   : > { %v1443_v60 = vpop.f32.mrf.mxu1 }
 0x31c   : > { %v1214_v57 = vpop.f32.mrf.mxu2  ;;  %v2883_v63 = vadd.f32 %v1443_v60, %v1406_v59 }
 0x31d   : > { %v2889_v2 = vadd.f32 %v1214_v57, %v1138_v41 }
 0x31e   : > { %v1488_v1 = vsel %vm697_vm2, %v2883_v63, -inf }
 0x31f   : > { %1224 = vmax.xlane.f32.xlu0 %v1223_v56  ;;  %v1226_v4 = vsel %vm697_vm2, %v2889_v2, -inf }
 0x328   : > { %v1479_v58 = vpop.f32.mrf.mxu2 }
 0x329   : > { %v2902_v10 = vadd.f32 %v1479_v58, %v1405_v50 }
 0x32b   : > { %v1491_v12 = vsel %vm697_vm2, %v2902_v10, -inf }
 0x330   : > { %v1482_v61 = vpop.f32.mrf.mxu2 }
 0x331   : > { %v2881_v62 = vadd.f32 %v1482_v61, %v1406_v59 }
 0x333   : > { %v1494_v0 = vsel %vm697_vm2, %v2881_v62, -inf }
 0x334   : > { %1495 = vmax.xlane.f32.xlu0 %v1494_v0 }
 0x338   : > { %1489 = vmax.xlane.f32.xlu2 %v1488_v1 }
 0x340   : > { %1227 = vmax.xlane.f32.xlu2 %v1226_v4 }
 0x342   : > { %956 = vmax.xlane.f32.xlu1 %v955_v5 }
 0x34a   : > { %959 = vmax.xlane.f32.xlu1 %v958_v7 }
 0x34b   : > { %v700_v8 = vpop.xlane.xlu0 %699 }
 0x34c   : > { %v710_v9 = vsub.f32 %v2837_v18, %v700_v8 }
 0x34e   : > { %v714_v11 = vmul.f32 1.442695, %v710_v9 }
 0x350   : > { %2200 = vpow2.f32 %v714_v11 }
 0x352   : > { %1492 = vmax.xlane.f32.xlu1 %v1491_v12 }
 0x356   : > { %v2906_v13 = vpop.eup %2200 }
 0x357   : > { %v722_v14 = vsel %vm697_vm2, %v2906_v13, 0.0 }
 0x358   : > { %723 = vadd.xlane.f32.xlu2 %v722_v14 }
 0x362   : > { %v951_v15 = vpop.xlane.xlu2 %950 }
 0x363   : > { %v961_v16 = vsub.f32 %v2841_v23, %v951_v15 }
 0x365   : > { %v965_v17 = vmul.f32 1.442695, %v961_v16 }
 0x367   : > { %2202 = vpow2.f32 %v965_v17 }
 0x36a   : > { %v703_v18 = vpop.xlane.xlu2 %702  ;;  %v954_v19 = vpop.xlane.xlu1 %953 }
 0x36b   : > { %v711_v20 = vsub.f32 %v2845_v29, %v703_v18  ;;  %v962_v21 = vsub.f32 %v2847_v31, %v954_v19  ;;  %2162 = vrot.lane.b32.xlu1 %v2801_v36, %s2539_s16 }
 0x36d   : > { %v2915_v22 = vpop.eup %2202  ;;  %v716_v24 = vmul.f32 1.442695, %v711_v20  ;;  %v967_v25 = vmul.f32 1.442695, %v962_v21 }
 0x36e   : > { %v973_v27 = vsel %vm697_vm2, %v2915_v22, 0.0 }
 0x36f   : > { %2204 = vpow2.f32 %v716_v24  ;;  %974 = vadd.xlane.f32.xlu0 %v973_v27 }
 0x370   : > { %2206 = vpow2.f32 %v967_v25 }
 0x372   : > { %v706_v23 = vpop.xlane.xlu1 %705  ;;  %v1219_v29 = vpop.xlane.xlu0 %1218 }
 0x373   : > { %v712_v28 = vsub.f32 %v2853_v35, %v706_v23  ;;  %v1229_v30 = vsub.f32 %v2855_v39, %v1219_v29  ;;  %v2153_v42 = vpop.permute.xlu2 %2152 }
 0x374   : > { %v2154_v47 = vunpack.i.l.bf16 %v2153_v42  ;;  %v2155_v49 = vunpack.i.h.bf16 %v2153_v42 }
 0x375   : > { %v2921_v31 = vpop.eup %2204  ;;  %v718_v32 = vmul.f32 1.442695, %v712_v28  ;;  %v1233_v34 = vmul.f32 1.442695, %v1229_v30 }
 0x376   : > { %v2923_v33 = vpop.eup %2206  ;;  %v725_v37 = vsel %vm697_vm2, %v2921_v31, 0.0 }
 0x377   : > { %2208 = vpow2.f32 %v718_v32  ;;  %v976_v38 = vsel %vm697_vm2, %v2923_v33, 0.0  ;;  %726 = vadd.xlane.f32.xlu2 %v725_v37 }
 0x378   : > { %2210 = vpow2.f32 %v1233_v34  ;;  %977 = vadd.xlane.f32.xlu0 %v976_v38 }
 0x37a   : > { %v1222_v50 = vpop.xlane.xlu0 %1221 }
 0x37b   : > { %v1230_v57 = vsub.f32 %v2861_v44, %v1222_v50 }
 0x37d   : > { %v2929_v35 = vpop.eup %2208  ;;  %v1235_v61 = vmul.f32 1.442695, %v1230_v57 }
 0x37e   : > { %v2931_v26 = vpop.eup %2210  ;;  %v728_v39 = vsel %vm697_vm2, %v2929_v35, 0.0 }
 0x37f   : > { %729 = vadd.xlane.f32.xlu2 %v728_v39  ;;  %v1241_v40 = vsel %vm697_vm2, %v2931_v26, 0.0 }
 0x380   : > { %1242 = vadd.xlane.f32.xlu0 %v1241_v40 }
 0x382   : > { %v709_v51 = vpop.xlane.xlu0 %708 }
 0x383   : > { %v713_v54 = vsub.f32 %v2865_v46, %v709_v51 }
 0x385   : > { %v720_v59 = vmul.f32 1.442695, %v713_v54 }
 0x38a   : > { %v2148_v41 = vpop.permute.xlu1 %2147  ;;  %v1487_v60 = vpop.xlane.xlu0 %1486 }
 0x38b   : > { %v2149_v43 = vunpack.i.l.bf16 %v2148_v41  ;;  %v2150_v45 = vunpack.i.h.bf16 %v2148_v41  ;;  %v1497_v1 = vsub.f32 %v2871_v52, %v1487_v60 }
 0x38d   : > { %820 = vmatpush.msra.mxu3 %v2149_v43 }
 0x38f   : > { %821 = vmatpush.msra.mxu3 %v2150_v45 }
 0x391   : > { %855 = vmatpush.msrb.mxu3 %v2154_v47 }
 0x392   : > { %v2953_v52 = vpop.xlane.xlu0 %1224 }
 0x393   : > { %856 = vmatpush.msrb.mxu3 %v2155_v49 }
 0x394   : > { %2167 = vrot.lane.b32.xlu0 %v2803_v48, %s2540_s18 }
 0x397   : > { %2157 = vrot.lane.b32.xlu2 %v2801_v36, %s2540_s18  ;;  %s1761_s18 = scalar_lea.sflag [#allocation6], %s2737_s5 }
 0x3ab   : > { %v1490_v53 = vpop.xlane.xlu2 %1489 }
 0x3ac   : > { %v1498_v56 = vsub.f32 %v2883_v63, %v1490_v53  ;;  %v1501_v63 = vmul.f32 1.442695, %v1497_v1 }
 0x3ae   : > { %v1503_v58 = vmul.f32 1.442695, %v1498_v56 }
 0x3b0   : > { %2212 = vpow2.f32 %v1503_v58 }
 0x3b1   : > { %2214 = vpow2.f32 %v720_v59 }
 0x3b2   : > { %2216 = vpow2.f32 %v1235_v61 }
 0x3b3   : > { %v1228_v0 = vpop.xlane.xlu2 %1227  ;;  %2218 = vpow2.f32 %v1501_v63 }
 0x3b4   : > { %v1232_v7 = vsub.f32 %v2889_v2, %v1228_v0 }
 0x3b5   : > { %v957_v4 = vpop.xlane.xlu1 %956 }
 0x3b6   : > { %v2943_v5 = vpop.eup %2212  ;;  %v1239_v8 = vmul.f32 1.442695, %v1232_v7  ;;  %v963_v11 = vsub.f32 %v2891_v3, %v957_v4  ;;  %v1496_v3 = vpop.xlane.xlu0 %1495 }
 0x3b7   : > { %v1512_v46 = vsel %vm697_vm2, %v2943_v5, 0.0  ;;  %v2948_v44 = vpop.eup %2214  ;;  %v1500_v24 = vsub.f32 %v2881_v62, %v1496_v3 }
 0x3b8   : > { %1513 = vadd.xlane.f32.xlu1 %v1512_v46  ;;  %v2950_v9 = vpop.eup %2216  ;;  %v731_v2 = vsel %vm697_vm2, %v2948_v44, 0.0  ;;  %2220 = vpow2.f32 %v1239_v8  ;;  %v969_v15 = vmul.f32 1.442695, %v963_v11 }
 0x3b9   : > { %v1244_v14 = vsel %vm697_vm2, %v2950_v9, 0.0  ;;  %v2961_v16 = vpop.eup %2218  ;;  %v1507_v28 = vmul.f32 1.442695, %v1500_v24 }
 0x3ba   : > { %2222 = vpow2.f32 %v969_v15  ;;  %v1509_v19 = vsel %vm697_vm2, %v2961_v16, 0.0 }
 0x3bd   : > { %v2955_v12 = vpop.xlane.xlu1 %959 }
 0x3be   : > { %732 = vadd.xlane.f32.xlu0 %v731_v2  ;;  %v2963_v17 = vpop.eup %2220 }
 0x3bf   : > { %v1250_v21 = vsel %vm697_vm2, %v2963_v17, 0.0 }
 0x3c0   : > { %1245 = vadd.xlane.f32.xlu2 %v1244_v14  ;;  %v2971_v27 = vpop.eup %2222 }
 0x3c1   : > { %v979_v29 = vsel %vm697_vm2, %v2971_v27, 0.0 }
 0x3c5   : > { %v1493_v18 = vpop.xlane.xlu1 %1492 }
 0x3c6   : > { %v1499_v20 = vsub.f32 %v2902_v10, %v1493_v18  ;;  %1510 = vadd.xlane.f32.xlu0 %v1509_v19 }
 0x3c8   : > { %v1505_v25 = vmul.f32 1.442695, %v1499_v20  ;;  %1251 = vadd.xlane.f32.xlu2 %v1250_v21  ;;  %v964_v21 = vsub.f32 %v2897_v6, %v2955_v12 }
 0x3ca   : > { %2224 = vpow2.f32 %v1505_v25 }
 0x3cb   : > { %v724_v23 = vpop.xlane.xlu2 %723 }
 0x3cc   : > { %2226 = vrcp.f32 %v724_v23  ;;  %v745_v38 = vand.u32 2147483648, %v724_v23  ;;  %v743_v40 = vand.u32 2147483647, %v724_v23  ;;  %vm739_vm4 = vweird.f32 %v724_v23 }
 0x3cd   : > { %2228 = vpow2.f32 %v1507_v28  ;;  %v971_v28 = vmul.f32 1.442695, %v964_v21 }
 0x3ce   : > { %980 = vadd.xlane.f32.xlu0 %v979_v29  ;;  %v746_v43 = vor.u32 1.1754944e-38, %v745_v38  ;;  %vm744_vm6 = vcmp.eq.f32.partialorder %v743_v40, 8.507059e+37  ;;  %v1231_v38 = vsub.f32 %v2877_v55, %v2953_v52 }
 0x3d0   : > { %v2975_v30 = vpop.eup %2224  ;;  %v1237_v6 = vmul.f32 1.442695, %v1231_v38 }
 0x3d1   : > { %v1515_v10 = vsel %vm697_vm2, %v2975_v30, 0.0 }
 0x3d2   : > { %v2227_v32 = vpop.eup %2226  ;;  %1516 = vadd.xlane.f32.xlu2 %v1515_v10 }
 0x3d3   : > { %v735_v62 = vmul.f32 %v2227_v32, %v724_v23  ;;  %v2979_v37 = vpop.eup %2228  ;;  %vm740_vm3 = vweird.f32 %v2227_v32 }
 0x3d4   : > { %v1518_v41 = vsel %vm697_vm2, %v2979_v37, 0.0  ;;  %vm741_vm5 = vmor %vm739_vm4, %vm740_vm3 }
 0x3d5   : > { %v736_v34 = vsub.f32 1.0, %v735_v62 }
 0x3d7   : > { %v737_v39 = vmul.f32 %v2227_v32, %v736_v34 }
 0x3d9   : > { %v738_v42 = vadd.f32 %v2227_v32, %v737_v39 }
 0x3da   : > { %1519 = vadd.xlane.f32.xlu2 %v1518_v41 }
 0x3db   : > { %v742_v45 = vsel %vm741_vm5, %v2227_v32, %v738_v42 }
 0x3dc   : > { %v747_v47 = vsel %vm744_vm6, %v746_v43, %v742_v45 }
 0x3dd   : > { %v748_v49 = vmul.f32 %v2906_v13, %v747_v47  ;;  %v2163_v25 = vpop.permute.xlu1 %2162 }
 0x3de   : > { %v2164_v29 = vunpack.i.l.bf16 %v2163_v25  ;;  %v2165_v62 = vunpack.i.h.bf16 %v2163_v25 }
 0x3df   : > { %1950 = vmatmul.msk.f32.vlgmr.msra.gmra.mxu3 %vm697_vm2, %v748_v49 }
 0x3e2   : > { %2172 = vrot.lane.b32.xlu0 %v2801_v36, %s2541_s1  ;;  %v2987_v50 = vpop.xlane.xlu0 %974 }
 0x3ea   : > { %2177 = vrot.lane.b32.xlu0 %v2803_v48, %s2539_s16  ;;  %v727_v51 = vpop.xlane.xlu2 %726  ;;  %s1779_s16 = sshll.u32 %s1776_s24, 4  ;;  %s1780_s16 = int_to_ptr.hbm [resolvable:$true] %s1779_s16 }
 0x3eb   : > { %2230 = vrcp.f32 %v727_v51  ;;  %v2991_v58 = vpop.xlane.xlu0 %977  ;;  %v760_v59 = vand.u32 2147483648, %v727_v51  ;;  %v758_v60 = vand.u32 2147483647, %v727_v51  ;;  %vm754_vm8 = vweird.f32 %v727_v51 }
 0x3ed   : > { %v761_v0 = vor.u32 1.1754944e-38, %v760_v59  ;;  %vm759_vm10 = vcmp.eq.f32.partialorder %v758_v60, 8.507059e+37 }
 0x3f1   : > { %v2231_v53 = vpop.eup %2230 }
 0x3f2   : > { %v750_v54 = vmul.f32 %v2231_v53, %v727_v51  ;;  %v730_v56 = vpop.xlane.xlu2 %729  ;;  %vm755_vm7 = vweird.f32 %v2231_v53 }
 0x3f3   : > { %2232 = vrcp.f32 %v730_v56  ;;  %vm756_vm9 = vmor %vm754_vm8, %vm755_vm7  ;;  %v775_v11 = vand.u32 2147483648, %v730_v56  ;;  %v773_v15 = vand.u32 2147483647, %v730_v56  ;;  %v2994_v3 = vpop.xlane.xlu0 %1242  ;;  %vm769_vm12 = vweird.f32 %v730_v56 }
 0x3f4   : > { %v751_v57 = vsub.f32 1.0, %v750_v54  ;;  %2234 = vpow2.f32 %v971_v28  ;;  %vm990_vm8 = vweird.f32 %v2987_v50  ;;  %v1009_v28 = vand.u32 2147483647, %v2991_v58 }
 0x3f5   : > { %v776_v20 = vor.u32 1.1754944e-38, %v775_v11  ;;  %vm774_vm14 = vcmp.eq.f32.partialorder %v773_v15, 8.507059e+37  ;;  %2236 = vpow2.f32 %v1237_v6 }
 0x3f6   : > { %v752_v13 = vmul.f32 %v2231_v53, %v751_v57  ;;  %2238 = vrcp.f32 %v2987_v50 }
 0x3f8   : > { %v753_v36 = vadd.f32 %v2231_v53, %v752_v13 }
 0x3f9   : > { %v2233_v61 = vpop.eup %2232 }
 0x3fa   : > { %v765_v1 = vmul.f32 %v2233_v61, %v730_v56  ;;  %v2158_v4 = vpop.permute.xlu2 %2157  ;;  %v757_v7 = vsel %vm756_vm9, %v2231_v53, %v753_v36  ;;  %vm770_vm11 = vweird.f32 %v2233_v61  ;;  %v3003_v12 = vpop.eup %2234 }
 0x3fb   : > { %v2159_v46 = vunpack.i.l.bf16 %v2158_v4  ;;  %v762_v8 = vsel %vm759_vm10, %v761_v0, %v757_v7  ;;  %v2160_v18 = vunpack.i.h.bf16 %v2158_v4  ;;  %vm771_vm13 = vmor %vm769_vm12, %vm770_vm11  ;;  %v3007_v39 = vpop.eup %2236  ;;  %v996_v7 = vand.u32 2147483648, %v2987_v50 }
 0x3fc   : > { %v766_v63 = vsub.f32 1.0, %v765_v1  ;;  %v763_v2 = vmul.f32 %v2921_v31, %v762_v8  ;;  %v1247_v40 = vsel %vm697_vm2, %v3007_v39, 0.0  ;;  %v2239_v52 = vpop.eup %2238  ;;  %vm1005_vm12 = vweird.f32 %v2991_v58 }
 0x3fd   : > { %1071 = vmatpush.msra.mxu3 %v2159_v46  ;;  %v986_v41 = vmul.f32 %v2239_v52, %v2987_v50  ;;  %vm991_vm6 = vweird.f32 %v2239_v52  ;;  %v997_v15 = vor.u32 1.1754944e-38, %v996_v7 }
 0x3fe   : > { %v767_v14 = vmul.f32 %v2233_v61, %v766_v63  ;;  %1951 = vmatmul.msk.f32.gmra.mxu3 %vm697_vm2, %v763_v2  ;;  %v994_v63 = vand.u32 2147483647, %v2987_v50  ;;  %vm992_vm9 = vmor %vm990_vm8, %vm991_vm6  ;;  %vm1258_vm8 = vweird.f32 %v2994_v3 }
 0x3ff   : > { %1072 = vmatpush.msra.mxu3 %v2160_v18  ;;  %v987_v47 = vsub.f32 1.0, %v986_v41 }
 0x400   : > { %v768_v19 = vadd.f32 %v2233_v61, %v767_v14  ;;  %vm995_vm10 = vcmp.eq.f32.partialorder %v994_v63, 8.507059e+37 }
 0x402   : > { %v772_v24 = vsel %vm771_vm13, %v2233_v61, %v768_v19 }
 0x403   : > { %v777_v31 = vsel %vm774_vm14, %v776_v20, %v772_v24  ;;  %v1011_v24 = vand.u32 2147483648, %v2991_v58 }
 0x404   : > { %v778_v23 = vmul.f32 %v2929_v35, %v777_v31  ;;  %v982_v35 = vsel %vm697_vm2, %v3003_v12, 0.0 }
 0x405   : > { %v1012_v38 = vor.u32 1.1754944e-38, %v1011_v24 }
 0x406   : > { %v2168_v10 = vpop.permute.xlu0 %2167  ;;  %1952 = vmatmul.msk.f32.vlgmr.msrb.gmra.mxu3 %vm697_vm2, %v778_v23 }
 0x407   : > { %v2169_v32 = vunpack.i.l.bf16 %v2168_v10  ;;  %1339 = vmatpush.msrb.mxu3 %v2164_v29  ;;  %v2170_v34 = vunpack.i.h.bf16 %v2168_v10 }
 0x409   : > { %1106 = vmatpush.msrb.mxu0 %v2169_v32  ;;  %1340 = vmatpush.msrb.mxu3 %v2165_v62 }
 0x40b   : > { %1107 = vmatpush.msrb.mxu0 %v2170_v34 }
 0x414   : > { %983 = vadd.xlane.f32.xlu0 %v982_v35 }
 0x41c   : > { %1248 = vadd.xlane.f32.xlu0 %v1247_v40 }
 0x430   : > { %2182 = vrot.lane.b32.xlu0 %v2803_v48, %s2541_s1  ;;  %v988_v48 = vmul.f32 %v2239_v52, %v987_v47  ;;  %s2428_s1 = sshra.s32 %s1780_s16, 4  ;;  %s2429_s1 = int_to_ptr.hbm [resolvable:$true] %s2428_s1 }
 0x431   : > { %v733_v55 = vpop.xlane.xlu0 %732  ;;  %p2435_p10 = scmp.lt.s32.totalorder %s2429_s1, %s3254_s26 }
 0x432   : > { %2240 = vrcp.f32 %v733_v55  ;;  %v790_v54 = vand.u32 2147483648, %v733_v55  ;;  %v788_v57 = vand.u32 2147483647, %v733_v55  ;;  %vm784_vm4 = vweird.f32 %v733_v55 }
 0x433   : > { %2242 = vrcp.f32 %v2991_v58  ;;  %v989_v61 = vadd.f32 %v2239_v52, %v988_v48  ;;  %v3023_v1 = vpop.xlane.xlu2 %1245 }
 0x434   : > { %2244 = vrcp.f32 %v2994_v3  ;;  %v791_v59 = vor.u32 1.1754944e-38, %v790_v54  ;;  %vm789_vm7 = vcmp.eq.f32.partialorder %v788_v57, 8.507059e+37 }
 0x435   : > { %v993_v11 = vsel %vm992_vm9, %v2239_v52, %v989_v61 }
 0x436   : > { %v998_v19 = vsel %vm995_vm10, %v997_v15, %v993_v11 }
 0x437   : > { %v999_v23 = vmul.f32 %v2915_v22, %v998_v19 }
 0x438   : > { %v2241_v42 = vpop.eup %2240 }
 0x439   : > { %v780_v43 = vmul.f32 %v2241_v42, %v733_v55  ;;  %v3016_v45 = vpop.xlane.xlu0 %1510  ;;  %v3018_v49 = vpop.eup %2242  ;;  %vm785_vm3 = vweird.f32 %v2241_v42 }
 0x43a   : > { %v1001_v56 = vmul.f32 %v3018_v49, %v2991_v58  ;;  %vm786_vm5 = vmor %vm784_vm4, %vm785_vm3  ;;  %v3025_v4 = vpop.eup %2244  ;;  %vm1006_vm11 = vweird.f32 %v3018_v49  ;;  %v3053_v55 = vpop.xlane.xlu1 %1513  ;;  %v1530_v19 = vand.u32 2147483647, %v3016_v45 }
 0x43b   : > { %v781_v51 = vsub.f32 1.0, %v780_v43  ;;  %v1254_v14 = vmul.f32 %v3025_v4, %v2994_v3  ;;  %vm1007_vm14 = vmor %vm1005_vm12, %vm1006_vm11  ;;  %v1264_v43 = vand.u32 2147483648, %v2994_v3  ;;  %vm1273_vm12 = vweird.f32 %v3023_v1 }
 0x43c   : > { %v1002_v0 = vsub.f32 1.0, %v1001_v56 }
 0x43d   : > { %v782_v53 = vmul.f32 %v2241_v42, %v781_v51  ;;  %v1255_v50 = vsub.f32 1.0, %v1254_v14 }
 0x43e   : > { %v1003_v2 = vmul.f32 %v3018_v49, %v1002_v0 }
 0x43f   : > { %v783_v13 = vadd.f32 %v2241_v42, %v782_v53  ;;  %v1256_v32 = vmul.f32 %v3025_v4, %v1255_v50 }
 0x441   : > { %v981_v60 = vpop.xlane.xlu0 %980  ;;  %v787_v36 = vsel %vm786_vm5, %v2241_v42, %v783_v13  ;;  %vm1010_vm5 = vcmp.eq.f32.partialorder %v1009_v28, 8.507059e+37  ;;  %v1257_v40 = vadd.f32 %v3025_v4, %v1256_v32 }
 0x442   : > { %2246 = vrcp.f32 %v981_v60  ;;  %v792_v46 = vsel %vm789_vm7, %v791_v59, %v787_v36  ;;  %v1026_v31 = vand.u32 2147483648, %v981_v60  ;;  %v1024_v10 = vand.u32 2147483647, %v981_v60 }
 0x443   : > { %v793_v8 = vmul.f32 %v2948_v44, %v792_v46  ;;  %2248 = vrcp.f32 %v3023_v1  ;;  %v1004_v44 = vadd.f32 %v3018_v49, %v1003_v2  ;;  %vm1020_vm3 = vweird.f32 %v981_v60 }
 0x444   : > { %2250 = vrcp.f32 %v3016_v45  ;;  %v1027_v22 = vor.u32 1.1754944e-38, %v1026_v31  ;;  %vm1025_vm6 = vcmp.eq.f32.partialorder %v1024_v10, 8.507059e+37  ;;  %vm1259_vm7 = vweird.f32 %v3025_v4 }
 0x445   : > { %1953 = vmatmul.msk.f32.gmra.mxu3 %vm697_vm2, %v793_v8  ;;  %v1008_v34 = vsel %vm1007_vm14, %v3018_v49, %v1004_v44  ;;  %v1262_v49 = vand.u32 2147483647, %v2994_v3  ;;  %vm1260_vm9 = vmor %vm1258_vm8, %vm1259_vm7  ;;  %2252 = vrcp.f32 %v3053_v55  ;;  %v1279_v36 = vand.u32 2147483648, %v3023_v1 }
 0x446   : > { %v1013_v58 = vsel %vm1010_vm5, %v1012_v38, %v1008_v34  ;;  %v1261_v48 = vsel %vm1260_vm9, %v3025_v4, %v1257_v40  ;;  %v1277_v4 = vand.u32 2147483647, %v3023_v1  ;;  %v1547_v31 = vand.u32 2147483648, %v3053_v55 }
 0x447   : > { %v1014_v53 = vmul.f32 %v2923_v33, %v1013_v58  ;;  %vm1263_vm10 = vcmp.eq.f32.partialorder %v1262_v49, 8.507059e+37  ;;  %v1280_v11 = vor.u32 1.1754944e-38, %v1279_v36  ;;  %vm1541_vm8 = vweird.f32 %v3053_v55 }
 0x448   : > { %v2247_v18 = vpop.eup %2246  ;;  %vm1278_vm14 = vcmp.eq.f32.partialorder %v1277_v4, 8.507059e+37  ;;  %v1548_v28 = vor.u32 1.1754944e-38, %v1547_v31 }
 0x449   : > { %v1016_v20 = vmul.f32 %v2247_v18, %v981_v60  ;;  %v3039_v21 = vpop.eup %2248  ;;  %vm1021_vm13 = vweird.f32 %v2247_v18 }
 0x44a   : > { %v1269_v62 = vmul.f32 %v3039_v21, %v3023_v1  ;;  %vm1022_vm4 = vmor %vm1020_vm3, %vm1021_vm13  ;;  %v2251_v42 = vpop.eup %2250  ;;  %vm1274_vm11 = vweird.f32 %v3039_v21  ;;  %v1532_v1 = vand.u32 2147483648, %v3016_v45 }
 0x44b   : > { %v1017_v25 = vsub.f32 1.0, %v1016_v20  ;;  %v1522_v57 = vmul.f32 %v2251_v42, %v3016_v45  ;;  %v2253_v60 = vpop.eup %2252  ;;  %vm1275_vm13 = vmor %vm1273_vm12, %vm1274_vm11  ;;  %vm1527_vm3 = vweird.f32 %v2251_v42 }
 0x44c   : > { %v1270_v52 = vsub.f32 1.0, %v1269_v62  ;;  %v1537_v46 = vmul.f32 %v2253_v60, %v3053_v55  ;;  %vm1542_vm7 = vweird.f32 %v2253_v60  ;;  %v3089_v62 = vpop.xlane.xlu2 %1251 }
 0x44d   : > { %v1018_v29 = vmul.f32 %v2247_v18, %v1017_v25  ;;  %1962 = vmatmul.msk.f32.vlgmr.msra.gmra.mxu3 %vm697_vm2, %v999_v23  ;;  %v1523_v33 = vsub.f32 1.0, %v1522_v57  ;;  %vm1543_vm9 = vmor %vm1541_vm8, %vm1542_vm7  ;;  %vm1303_vm8 = vweird.f32 %v3089_v62 }
 0x44e   : > { %v1271_v56 = vmul.f32 %v3039_v21, %v1270_v52  ;;  %v1538_v15 = vsub.f32 1.0, %v1537_v46  ;;  %v1309_v46 = vand.u32 2147483648, %v3089_v62 }
 0x44f   : > { %v1019_v6 = vadd.f32 %v2247_v18, %v1018_v29  ;;  %v1524_v63 = vmul.f32 %v2251_v42, %v1523_v33 }
 0x450   : > { %v1272_v59 = vadd.f32 %v3039_v21, %v1271_v56  ;;  %v1539_v50 = vmul.f32 %v2253_v60, %v1538_v15 }
 0x451   : > { %v1023_v35 = vsel %vm1022_vm4, %v2247_v18, %v1019_v6  ;;  %v1525_v18 = vadd.f32 %v2251_v42, %v1524_v63  ;;  %vm1526_vm4 = vweird.f32 %v3016_v45  ;;  %v1545_v45 = vand.u32 2147483647, %v3053_v55 }
 0x452   : > { %v1028_v41 = vsel %vm1025_vm6, %v1027_v22, %v1023_v35  ;;  %v1276_v8 = vsel %vm1275_vm13, %v3039_v21, %v1272_v59  ;;  %vm1528_vm5 = vmor %vm1526_vm4, %vm1527_vm3  ;;  %v1533_v21 = vor.u32 1.1754944e-38, %v1532_v1  ;;  %vm1531_vm6 = vcmp.eq.f32.partialorder %v1530_v19, 8.507059e+37 }
 0x453   : > { %v1029_v47 = vmul.f32 %v2971_v27, %v1028_v41  ;;  %v1265_v27 = vor.u32 1.1754944e-38, %v1264_v43  ;;  %v1281_v14 = vsel %vm1278_vm14, %v1280_v11, %v1276_v8  ;;  %v1529_v44 = vsel %vm1528_vm5, %v2251_v42, %v1525_v18 }
 0x454   : > { %v2173_v51 = vpop.permute.xlu0 %2172  ;;  %v1282_v20 = vmul.f32 %v2950_v9, %v1281_v14  ;;  %v1534_v24 = vsel %vm1531_vm6, %v1533_v21, %v1529_v44  ;;  %v1540_v25 = vadd.f32 %v2253_v60, %v1539_v50  ;;  %v3093_v38 = vpop.xlane.xlu2 %1516  ;;  %v1307_v11 = vand.u32 2147483647, %v3089_v62 }
 0x455   : > { %v2174_v54 = vunpack.i.l.bf16 %v2173_v51  ;;  %1964 = vmatmul.msk.f32.vlgmr.msrb.gmra.mxu0 %vm697_vm2, %v1029_v47  ;;  %1963 = vmatmul.msk.f32.gmra.mxu3 %vm697_vm2, %v1014_v53  ;;  %v2175_v13 = vunpack.i.h.bf16 %v2173_v51  ;;  %v1266_v3 = vsel %vm1263_vm10, %v1265_v27, %v1261_v48  ;;  %v1535_v23 = vmul.f32 %v2961_v16, %v1534_v24 }
 0x456   : > { %v1267_v0 = vmul.f32 %v2931_v26, %v1266_v3  ;;  %v1544_v9 = vsel %vm1543_vm9, %v2253_v60, %v1540_v25  ;;  %vm1546_vm10 = vcmp.eq.f32.partialorder %v1545_v45, 8.507059e+37  ;;  %v1310_v1 = vor.u32 1.1754944e-38, %v1309_v46  ;;  %v1725_v46 = vld [vmem:[#allocation2] sm:$0xff] }
 0x457   : > { %1607 = vmatpush.msra.mxu3 %v2174_v54  ;;  %v1549_v29 = vsel %vm1546_vm10, %v1548_v28, %v1544_v9  ;;  %vm1308_vm10 = vcmp.eq.f32.partialorder %v1307_v11, 8.507059e+37  ;;  %v1560_v21 = vand.u32 2147483647, %v3093_v38 }
 0x458   : > { %v1550_v10 = vmul.f32 %v2943_v5, %v1549_v29 }
 0x459   : > { %1608 = vmatpush.msra.mxu3 %v2175_v13 }
 0x45c   : > { %v2178_v61 = vpop.permute.xlu0 %2177  ;;  %v3097_v51 = vpop.xlane.xlu2 %1519 }
 0x45d   : > { %v2179_v7 = vunpack.i.l.bf16 %v2178_v61  ;;  %1974 = vmatmul.msk.f32.vlgmr.msrb.gmra.mxu3 %vm697_vm2, %v1267_v0  ;;  %v2180_v2 = vunpack.i.h.bf16 %v2178_v61  ;;  %v1577_v28 = vand.u32 2147483648, %v3097_v51 }
 0x45f   : > { %1374 = vmatpush.msra.mxu0 %v2179_v7 }
 0x461   : > { %1375 = vmatpush.msra.mxu0 %v2180_v2 }
 0x462   : > { %v823_v26 = vpop.f32.mrf.mxu3 }
 0x463   : > { %864 = vst.msk [vmem:[#allocation3] sm:$0xff] %vm624_vm15, %v823_v26 }
 0x465   : > { %1975 = vmatmul.msk.f32.gmra.mxu3 %vm697_vm2, %v1282_v20 }
 0x46d   : > { %1986 = vmatmul.msk.f32.vlgmr.msra.gmra.mxu3 %vm697_vm2, %v1535_v23 }
 0x475   : > { %1987 = vmatmul.msk.f32.gmra.mxu3 %vm697_vm2, %v1550_v10  ;;  %v1575_v10 = vand.u32 2147483647, %v3097_v51 }
 0x481   : > { %v826_v32 = vpop.f32.mrf.mxu3 }
 0x482   : > { %865 = vst.msk [vmem:[#allocation3 + $0x8] sm:$0xff] %vm624_vm15, %v826_v32  ;;  %v1578_v32 = vor.u32 1.1754944e-38, %v1577_v28 }
 0x487   : > { %v984_v34 = vpop.xlane.xlu0 %983 }
 0x488   : > { %2254 = vrcp.f32 %v984_v34  ;;  %v1041_v55 = vand.u32 2147483648, %v984_v34  ;;  %v1039_v41 = vand.u32 2147483647, %v984_v34  ;;  %vm1035_vm12 = vweird.f32 %v984_v34 }
 0x489   : > { %2256 = vrcp.f32 %v3089_v62  ;;  %v858_v16 = vpop.f32.mrf.mxu3 }
 0x48a   : > { %866 = vst.msk [vmem:[#allocation3 + $0x10] sm:$0xff] %vm624_vm15, %v858_v16  ;;  %v1042_v49 = vor.u32 1.1754944e-38, %v1041_v55  ;;  %vm1040_vm14 = vcmp.eq.f32.partialorder %v1039_v41, 8.507059e+37 }
 0x48e   : > { %v2255_v6 = vpop.eup %2254 }
 0x48f   : > { %v2257_v22 = vpop.eup %2256  ;;  %v1031_v58 = vmul.f32 %v2255_v6, %v984_v34  ;;  %v1249_v5 = vpop.xlane.xlu0 %1248  ;;  %vm1036_vm11 = vweird.f32 %v2255_v6 }
 0x490   : > { %2258 = vrcp.f32 %v1249_v5  ;;  %v1299_v40 = vmul.f32 %v2257_v22, %v3089_v62  ;;  %vm1037_vm13 = vmor %vm1035_vm12, %vm1036_vm11  ;;  %v1294_v3 = vand.u32 2147483648, %v1249_v5  ;;  %v1292_v60 = vand.u32 2147483647, %v1249_v5 }
 0x491   : > { %v1032_v35 = vsub.f32 1.0, %v1031_v58  ;;  %2260 = vrcp.f32 %v3093_v38  ;;  %vm1288_vm4 = vweird.f32 %v1249_v5  ;;  %vm1304_vm6 = vweird.f32 %v2257_v22 }
 0x492   : > { %v1300_v47 = vsub.f32 1.0, %v1299_v40  ;;  %2262 = vrcp.f32 %v3097_v51  ;;  %v1295_v61 = vor.u32 1.1754944e-38, %v1294_v3  ;;  %vm1293_vm7 = vcmp.eq.f32.partialorder %v1292_v60, 8.507059e+37  ;;  %vm1305_vm9 = vmor %vm1303_vm8, %vm1304_vm6 }
 0x493   : > { %v1033_v52 = vmul.f32 %v2255_v6, %v1032_v35  ;;  %vm1556_vm12 = vweird.f32 %v3093_v38  ;;  %vm1576_vm6 = vcmp.eq.f32.partialorder %v1575_v10, 8.507059e+37 }
 0x494   : > { %v1301_v13 = vmul.f32 %v2257_v22, %v1300_v47  ;;  %v1678_v47 = vld [vmem:[#allocation10 + $0x10] sm:$0xff] }
 0x495   : > { %v1034_v42 = vadd.f32 %v2255_v6, %v1033_v52 }
 0x496   : > { %v2259_v43 = vpop.eup %2258 }
 0x497   : > { %v1284_v53 = vmul.f32 %v2259_v43, %v1249_v5  ;;  %v1038_v54 = vsel %vm1037_vm13, %v2255_v6, %v1034_v42  ;;  %v2261_v48 = vpop.eup %2260  ;;  %vm1289_vm3 = vweird.f32 %v2259_v43 }
 0x498   : > { %v1043_v56 = vsel %vm1040_vm14, %v1042_v49, %v1038_v54  ;;  %v1552_v33 = vmul.f32 %v2261_v48, %v3093_v38  ;;  %vm1290_vm5 = vmor %vm1288_vm4, %vm1289_vm3  ;;  %v2263_v7 = vpop.eup %2262  ;;  %vm1557_vm11 = vweird.f32 %v2261_v48  ;;  %vm1561_vm14 = vcmp.eq.f32.partialorder %v1560_v21, 8.507059e+37  ;;  %v1677_v49 = vld [vmem:[#allocation10 + $0x8] sm:$0xff] }
 0x499   : > { %v1285_v57 = vsub.f32 1.0, %v1284_v53  ;;  %v1044_v27 = vmul.f32 %v3003_v12, %v1043_v56  ;;  %v1302_v12 = vadd.f32 %v2257_v22, %v1301_v13  ;;  %v1567_v15 = vmul.f32 %v2263_v7, %v3097_v51  ;;  %vm1558_vm13 = vmor %vm1556_vm12, %vm1557_vm11 }
 0x49a   : > { %v1553_v0 = vsub.f32 1.0, %v1552_v33  ;;  %vm1572_vm3 = vweird.f32 %v2263_v7  ;;  %vm1571_vm4 = vweird.f32 %v3097_v51  ;;  %v1676_v51 = vld [vmem:[#allocation10] sm:$0xff] }
 0x49b   : > { %v1286_v59 = vmul.f32 %v2259_v43, %v1285_v57  ;;  %1965 = vmatmul.msk.f32.gmra.mxu0 %vm697_vm2, %v1044_v27  ;;  %v1306_v26 = vsel %vm1305_vm9, %v2257_v22, %v1302_v12  ;;  %v1568_v44 = vsub.f32 1.0, %v1567_v15  ;;  %v2189_v12 = vld [vmem:[%s3217_s6] ss:$0 sm:$0xff] }
 0x49c   : > { %v1554_v14 = vmul.f32 %v2261_v48, %v1553_v0  ;;  %v1311_v20 = vsel %vm1308_vm10, %v1310_v1, %v1306_v26 }
 0x49d   : > { %v1287_v36 = vadd.f32 %v2259_v43, %v1286_v59  ;;  %v1312_v24 = vmul.f32 %v2963_v17, %v1311_v20  ;;  %v1569_v31 = vmul.f32 %v2263_v7, %v1568_v44 }
 0x49e   : > { %v1555_v50 = vadd.f32 %v2261_v48, %v1554_v14 }
 0x49f   : > { %v1291_v4 = vsel %vm1290_vm5, %v2259_v43, %v1287_v36  ;;  %v1570_v9 = vadd.f32 %v2263_v7, %v1569_v31  ;;  %vm1573_vm5 = vmor %vm1571_vm4, %vm1572_vm3  ;;  %v1679_v43 = vld [vmem:[#allocation10 + $0x18] sm:$0xff] }
 0x4a0   : > { %v1296_v63 = vsel %vm1293_vm7, %v1295_v61, %v1291_v4  ;;  %v1559_v25 = vsel %vm1558_vm13, %v2261_v48, %v1555_v50  ;;  %1708 = vmatpush.msrb.mxu1 %v1679_v43  ;;  %vm1667_vm7 = vcmask 261312   ;;  %v1727_v50 = vld [vmem:[#allocation2 + $0x10] sm:$0xff] }
 0x4a1   : > { %v1297_v8 = vmul.f32 %v3007_v39, %v1296_v63  ;;  %v1562_v39 = vand.u32 2147483648, %v3093_v38  ;;  %v1574_v17 = vsel %vm1573_vm5, %v2263_v7, %v1570_v9 }
 0x4a2   : > { %v2183_v2 = vpop.permute.xlu0 %2182  ;;  %v1579_v62 = vsel %vm1576_vm6, %v1578_v32, %v1574_v17  ;;  %1709 = vmatpush.msrb.mxu1 %v1678_v47 }
 0x4a3   : > { %v2184_v18 = vunpack.i.l.bf16 %v2183_v2  ;;  %1976 = vmatmul.msk.f32.vlgmr.msra.gmra.mxu0 %vm697_vm2, %v1297_v8  ;;  %v2185_v19 = vunpack.i.h.bf16 %v2183_v2  ;;  %v1563_v23 = vor.u32 1.1754944e-38, %v1562_v39  ;;  %v1580_v34 = vmul.f32 %v2979_v37, %v1579_v62  ;;  %v1726_v2 = vld [vmem:[#allocation2 + $0x8] sm:$0xff] }
 0x4a4   : > { %1710 = vmatpush.msrb.mxu1 %v1677_v49 }
 0x4a5   : > { %1642 = vmatpush.msrb.mxu0 %v2184_v18  ;;  %v1564_v45 = vsel %vm1561_vm14, %v1563_v23, %v1559_v25 }
 0x4a6   : > { %v1565_v29 = vmul.f32 %v2975_v30, %v1564_v45  ;;  %1711 = vmatpush.msrb.mxu1 %v1676_v51 }
 0x4a7   : > { %1643 = vmatpush.msrb.mxu0 %v2185_v19 }
 0x4ab   : > { %1977 = vmatmul.msk.f32.gmra.mxu0 %vm697_vm2, %v1312_v24  ;;  %v1728_v24 = vld [vmem:[#allocation2 + $0x18] sm:$0xff] }
 0x4b3   : > { %1988 = vmatmul.msk.f32.vlgmr.msrb.gmra.mxu0 %vm697_vm2, %v1565_v29 }
 0x4bb   : > { %1989 = vmatmul.msk.f32.gmra.mxu0 %vm697_vm2, %v1580_v34  ;;  %vm1399_vm2 = vcmask 195712  }
 0x4c8   : > { %v861_v16 = vpop.f32.mrf.mxu3 }
 0x4c9   : > { %867 = vst.msk [vmem:[#allocation3 + $0x18] sm:$0xff] %vm624_vm15, %v861_v16  ;;  %vm1131_vm15 = vcmask 130112  }
 0x4d0   : > { %v1074_v38 = vpop.f32.mrf.mxu3 }
 0x4d1   : > { %1119 = vrot.lane.b32.xlu2 %v1074_v38, %s2542_s13 }
 0x4d2   : > { %v1109_v5 = vpop.f32.mrf.mxu0 }
 0x4d8   : > { %v1077_v30 = vpop.f32.mrf.mxu3 }
 0x4e0   : > { %v1342_v6 = vpop.f32.mrf.mxu3 }
 0x4e1   : > { %1387 = vrot.lane.b32.xlu0 %v1342_v6, %s2543_s27 }
 0x4e8   : > { %v1345_v22 = vpop.f32.mrf.mxu3 }
 0x4e9   : > { %1121 = vrot.lane.b32.xlu0 %v1077_v30, %s2542_s13 }
 0x4f0   : > { %v1610_v58 = vpop.f32.mrf.mxu3 }
 0x4f1   : > { %1389 = vrot.lane.b32.xlu0 %v1345_v22, %s2543_s27  ;;  %1655 = vrot.lane.b32.xlu1 %v1610_v58, %s2544_s14 }
 0x4f8   : > { %v1613_v37 = vpop.f32.mrf.mxu3 }
 0x4f9   : > { %1657 = vrot.lane.b32.xlu2 %v1613_v37, %s2544_s14  ;;  %1123 = vrot.lane.b32.xlu0 %v1109_v5, %s2542_s13 }
 0x518   : > { %v1112_v35 = vpop.f32.mrf.mxu0 }
 0x519   : > { %1125 = vrot.lane.b32.xlu1 %v1112_v35, %s2542_s13  ;;  %s2430_s13 = scalar_lea.hbm %s2429_s1, 32 }
 0x51a   : > { %p2431_p1 = scmp.ne.s32.totalorder %s2429_s1, %s2430_s13  ;;  %p2436_p11 = scmp.lt.s32.totalorder %s2434_s30, %s2430_s13 }
 0x51c   : > { %p2432_p4 = pnand %p2431_p1, %p2711_p5  ;;  %p2437_p12 = por %p2436_p11, %p2435_p10 }
 0x51e   : > { %p2433_p8 = pneg %p2432_p4 }
 0x520   : > { %v1377_v40 = vpop.f32.mrf.mxu0  ;;  %p2438_p13 = pnand %p2437_p12, %p2433_p8 }
 0x521   : > { %1391 = vrot.lane.b32.xlu2 %v1377_v40, %s2543_s27 }
 0x528   : > { %v1380_v55 = vpop.f32.mrf.mxu0 }
 0x529   : > { %1393 = vrot.lane.b32.xlu2 %v1380_v55, %s2543_s27 }
 0x52b   : > { %v1120_v52 = vpop.permute.xlu2 %1119 }
 0x52c   : > { %1132 = vst.msk [vmem:[#allocation3] sm:$0xff] %vm1131_vm15, %v1120_v52 }
 0x530   : > { %v1645_v41 = vpop.f32.mrf.mxu0 }
 0x531   : > { %1659 = vrot.lane.b32.xlu0 %v1645_v41, %s2544_s14 }
 0x538   : > { %v1648_v42 = vpop.f32.mrf.mxu0 }
 0x539   : > { %1661 = vrot.lane.b32.xlu0 %v1648_v42, %s2544_s14 }
 0x553   : > { %v1388_v53 = vpop.permute.xlu0 %1387  ;;  %v1658_v57 = vpop.permute.xlu2 %1657 }
 0x554   : > { %1400 = vst.msk [vmem:[#allocation3] sm:$0xff] %vm1399_vm2, %v1388_v53 }
 0x55b   : > { %v1122_v54 = vpop.permute.xlu0 %1121 }
 0x55c   : > { %1133 = vst.msk [vmem:[#allocation3 + $0x8] sm:$0xff] %vm1131_vm15, %v1122_v54 }
 0x563   : > { %v1390_v48 = vpop.permute.xlu0 %1389  ;;  %v1656_v56 = vpop.permute.xlu1 %1655 }
 0x564   : > { %1401 = vst.msk [vmem:[#allocation3 + $0x8] sm:$0xff] %vm1399_vm2, %v1390_v48 }
 0x565   : > { %1669 = vst.msk [vmem:[#allocation3 + $0x8] sm:$0xff] %vm1667_vm7, %v1658_v57 }
 0x566   : > { %1668 = vst.msk [vmem:[#allocation3] sm:$0xff] %vm1667_vm7, %v1656_v56 }
 0x56b   : > { %v1124_v27 = vpop.permute.xlu0 %1123 }
 0x56c   : > { %1134 = vst.msk [vmem:[#allocation3 + $0x10] sm:$0xff] %vm1131_vm15, %v1124_v27  ;;  %v1673_v3 = vld [vmem:[#allocation3 + $0x8] sm:$0xff] }
 0x56d   : > { %v1672_v13 = vld [vmem:[#allocation3] sm:$0xff] }
 0x56e   : > { %1990 = vmatmul.msk.f32.vlgmr.msrb.gmra.mxu1 %vm451_vm1, %v1672_v13 }
 0x576   : > { %1991 = vmatmul.msk.f32.gmra.mxu1 %vm451_vm1, %v1673_v3 }
 0x57b   : > { %v1392_v33 = vpop.permute.xlu2 %1391 }
 0x57c   : > { %1402 = vst.msk [vmem:[#allocation3 + $0x10] sm:$0xff] %vm1399_vm2, %v1392_v33 }
 0x583   : > { %v1394_v60 = vpop.permute.xlu2 %1393 }
 0x58b   : > { %v1126_v59 = vpop.permute.xlu1 %1125 }
 0x58c   : > { %1135 = vst.msk [vmem:[#allocation3 + $0x18] sm:$0xff] %vm1131_vm15, %v1126_v59 }
 0x58d   : > { %1403 = vst.msk [vmem:[#allocation3 + $0x18] sm:$0xff] %vm1399_vm2, %v1394_v60 }
 0x5a3   : > { %v1660_v36 = vpop.permute.xlu0 %1659 }
 0x5a4   : > { %1670 = vst.msk [vmem:[#allocation3 + $0x10] sm:$0xff] %vm1667_vm7, %v1660_v36 }
 0x5ab   : > { %v1662_v61 = vpop.permute.xlu0 %1661  ;;  %v1674_v0 = vld [vmem:[#allocation3 + $0x10] sm:$0xff] }
 0x5ac   : > { %1671 = vst.msk [vmem:[#allocation3 + $0x18] sm:$0xff] %vm1667_vm7, %v1662_v61  ;;  %1992 = vmatmul.msk.f32.gmra.mxu1 %vm451_vm1, %v1674_v0 }
 0x5b3   : > { %v1675_v4 = vld [vmem:[#allocation3 + $0x18] sm:$0xff] }
 0x5b4   : > { %1993 = vmatmul.msk.f32.gmra.mxu1 %vm451_vm1, %v1675_v4 }
 0x5eb   : > { %v1713_v7 = vpop.f32.mrf.mxu1 }
 0x5ec   : > { %v1714_v63 = vadd.f32 %v2189_v12, %v1713_v7 }
 0x5ee   : > { %v1729_v8 = vadd.f32 %v1725_v46, %v1714_v63 }
 0x5f0   : > { %1733 = vst.msk [vmem:[#allocation2] sm:$0xff] %vm451_vm1, %v1729_v8 }
 0x5f3   : > { %v1716_v11 = vpop.f32.mrf.mxu1 }
 0x5f4   : > { %v1717_v14 = vadd.f32 %v2189_v12, %v1716_v11 }
 0x5f6   : > { %v1730_v15 = vadd.f32 %v1726_v2, %v1717_v14 }
 0x5f7   : > { %v1737_v18 = vld [vmem:[#allocation2] sm:$0xf]  ;;  %v1739_v26 = vld [vmem:[#allocation2 + $0x4] sm:$0xf] }
 0x5f8   : > { %1738 = vst.msk [vmem:[%s3144_s17] sm:$0xf] %vm424_vm0, %v1737_v18 }
 0x5f9   : > { %1994 = vst.msk [vmem:[%s3144_s17 + $0x4] sm:$0xf] %vm424_vm0, %v1739_v26 }
 0x5fa   : > { %1734 = vst.msk [vmem:[#allocation2 + $0x8] sm:$0xff] %vm451_vm1, %v1730_v15 }
 0x601   : > { %v1742_v1 = vld [vmem:[#allocation2 + $0x8] sm:$0xf]  ;;  %v1745_v19 = vld [vmem:[#allocation2 + $0xc] sm:$0xf] }
 0x602   : > { %1995 = vst.msk [vmem:[%s3144_s17 + $0x8] sm:$0xf] %vm424_vm0, %v1742_v1 }
 0x603   : > { %1996 = vst.msk [vmem:[%s3144_s17 + $0xc] sm:$0xf] %vm424_vm0, %v1745_v19 }
 0x629   : > { %v1719_v20 = vpop.f32.mrf.mxu1 }
 0x62a   : > { %v1720_v44 = vadd.f32 %v2189_v12, %v1719_v20 }
 0x62c   : > { %v1731_v39 = vadd.f32 %v1727_v50, %v1720_v44 }
 0x62e   : > { %1735 = vst.msk [vmem:[#allocation2 + $0x10] sm:$0xff] %vm451_vm1, %v1731_v39 }
 0x631   : > { %v1722_v21 = vpop.f32.mrf.mxu1 }
 0x632   : > { %v1723_v25 = vadd.f32 %v2189_v12, %v1722_v21 }
 0x634   : > { %v1732_v31 = vadd.f32 %v1728_v24, %v1723_v25 }
 0x635   : > { %v1748_v23 = vld [vmem:[#allocation2 + $0x10] sm:$0xf]  ;;  %v1751_v45 = vld [vmem:[#allocation2 + $0x14] sm:$0xf] }
 0x636   : > { %1997 = vst.msk [vmem:[%s3144_s17 + $0x10] sm:$0xf] %vm424_vm0, %v1748_v23 }
 0x637   : > { %1998 = vst.msk [vmem:[%s3144_s17 + $0x14] sm:$0xf] %vm424_vm0, %v1751_v45 }
 0x638   : > { %1736 = vst.msk [vmem:[#allocation2 + $0x18] sm:$0xff] %vm451_vm1, %v1732_v31 }
 0x63f   : > { %v1754_v9 = vld [vmem:[#allocation2 + $0x18] sm:$0xf]  ;;  %v1757_v28 = vld [vmem:[#allocation2 + $0x1c] sm:$0xf] }
 0x640   : > { %1999 = vst.msk [vmem:[%s3144_s17 + $0x18] sm:$0xf] %vm424_vm0, %v1754_v9 }
 0x641   : > { %2000 = vst.msk [vmem:[%s3144_s17 + $0x1c] sm:$0xf] %vm424_vm0, %v1757_v28 }
 0x642   : > { %2441 = shalt.err (!%p2438_p13)
}
 0x643   : > { %s2545_s5 = smov 128   ;;  %s2546_s17 = smov 4  }
 0x644   : > { %2024 = dma.vmem_to_hbm [thread:$0]  (%p2711_p5), %s1778_s19, 512, %s1780_s16, %s1761_s18, %s2538_s23, %s2545_s5, %s2546_s17  }
 0x645 PF: > { %s3255_s8 = sld [smem:[#allocation18_spill]]  ;;  %p2056_p0 = scmp.ge.s32.totalorder %s2520_s12, 2 }
 0x647   : > { %p2044_p3 = pnand %p2056_p0, %p2651_p6 }
 0x649   : > { %p2045_p7 = pneg %p2044_p3 }
 0x64b   : > { %s1794_s21 = sand.u32 1, %s3255_s8  }
 0x64c   : > { %s1795_s3 = scalar_lea.sflag [#allocation6], %s1794_s21 }
 0x64d   : > { %2487 = dma.done.wait (%p2045_p7), %s1795_s3, 512  }
 0x64e   : > { %2489 = vsyncadd (%p2045_p7), %s1795_s3, 4294966784  ;;  %s26_s12 = sadd.s32 1, %s2520_s12   ;;  %s3257_s23 = sld [smem:[#allocation21_spill]] }
 0x64f   : > { %p23_p9 = scmp.ge.s32.totalorder %s26_s12, 6   ;;  %s3258_s25 = sld [smem:[#allocation23_spill]] }
 0x650   : > { %s3259_s27 = smov %s2496_s28  ;;  %s3260_s28 = smov %s2500_s29 }
 0x651   : > { %s3261_s29 = smov %s2724_s7  ;;  %s3262_s30 = smov %s2512_s10 }
 0x652   : > { %s3263_s9 = smov %s2516_s11  ;;  %25 = sbr.rel (!%p23_p9) target bundleno = 15 (0xf), region = 130 }
 0x654   : > { %s3264_s10 = smov %s3257_s23 }
 0x655   : > { %s3265_s11 = smov %s3258_s25 }
 0x657   :  { %1801 = vsyncpa [#allocation5], 1 }
 0x658   :  { %1803 = vsyncpa [#allocation5 + $0x1], 1 }
 0x659   :  { %1804 = vsyncpa [#allocation8], 1 }
 0x65a   :  { %1805 = vsyncpa [#allocation11], 1 }
 0x65b   :  { %1806 = vsyncpa [#allocation6], 1 }
 0x65c   :  { %1808 = vsyncpa [#allocation6 + $0x1], 1 }

</bundles_post_ra>
